<compile_context>
chip_gen: v6e
topology: v6e:2x2x1
jax: 0.10.0
libtpu: 0.0.40
codegen_flags: <defaults>
</compile_context>

<pallas_src>
import functools

import jax
import jax.numpy as jnp
from jax.experimental import pallas as pl
from jax.experimental.pallas import tpu as pltpu


# Explicit VMEM budget: <= v7x's 64 MiB physical, raises v5e's 16 MiB default.
_VMEM_LIMIT = 32 * 1024 * 1024


def _largest_divisor(n, candidates):
    for c in candidates:
        if c <= n and n % c == 0:
            return c
    return n


# ----------------------- fused bidirectional LSTM ---------------------------

def _bilstm_kernel(len_ref, gx_ref, whh_ref, out_ref, h_scr, c_scr, *,
                   ts, hidden, nb):
    """One grid step = TS timesteps of one direction.

    grid = (direction, time_block).  direction is "parallel" (2 TensorCores
    on v7x), time_block is "arbitrary" (sequential recurrence; h/c carried in
    VMEM scratch across grid steps).
    """
    d = pl.program_id(0)          # 0 = forward, 1 = backward
    i = pl.program_id(1)          # time-block index (always ascending)

    @pl.when(i == 0)
    def _():
        h_scr[...] = jnp.zeros_like(h_scr)
        c_scr[...] = jnp.zeros_like(c_scr)

    # lengths stays a tiny (B,1) VMEM block: the mask compare below needs the
    # per-row lengths in a vector register anyway.
    lengths = len_ref[...]                      # (B, 1) int32
    whh = whh_ref[...]                          # (H, 4H) bf16, loaded once
    H = hidden
    # Absolute time of this block's first row (backward blocks are reversed).
    blk_t0 = (i * (1 - d) + (nb - 1 - i) * d) * ts

    def step(s, carry):
        h_prev, c_prev = carry
        # forward walks s_eff = 0..ts-1, backward walks ts-1..0
        s_eff = s * (1 - d) + (ts - 1 - s) * d
        t_abs = blk_t0 + s_eff

        # Only the recurrent matmul is left on the serial path (bf16 -> MXU).
        gates = gx_ref[s_eff] + jnp.dot(h_prev.astype(jnp.bfloat16), whh,
                                        preferred_element_type=jnp.float32)
        i_g = jax.nn.sigmoid(gates[:, 0 * H:1 * H])
        f_g = jax.nn.sigmoid(gates[:, 1 * H:2 * H])
        g_g = jnp.tanh(gates[:, 2 * H:3 * H])
        o_g = jax.nn.sigmoid(gates[:, 3 * H:4 * H])
        c_new = f_g * c_prev + i_g * g_g
        h_new = o_g * jnp.tanh(c_new)

        valid = lengths > t_abs                 # (B, 1) per-row length mask
        # pack_padded: hold the state past the sequence end;
        # pad_packed: zero the padded outputs.
        out_ref[s_eff] = jnp.where(valid, h_new, jnp.zeros_like(h_new))
        return (jnp.where(valid, h_new, h_prev),
                jnp.where(valid, c_new, c_prev))

    h, c = jax.lax.fori_loop(0, ts, step, (h_scr[...], c_scr[...]),
                             unroll=True)
    h_scr[...] = h
    c_scr[...] = c


def bilstm_recurrence(gx, whh, lengths_col, *, ts):
    """gx: (2, L, B, 4H) f32 precomputed input gates (biases folded in);
       whh: (2, H, 4H) bf16; lengths_col: (B, 1) int32.
       Returns (2, L, B, H) f32 hidden states (zeroed past each length)."""
    _, L, B, G = gx.shape
    H = whh.shape[1]
    nb = L // ts

    kernel = functools.partial(_bilstm_kernel, ts=ts, hidden=H, nb=nb)
    # Block index along time: forward reads block i, backward reads nb-1-i.
    time_idx = lambda d, i: (d, i * (1 - d) + (nb - 1 - i) * d, 0, 0)

    return pl.pallas_call(
        kernel,
        out_shape=jax.ShapeDtypeStruct((2, L, B, H), jnp.float32),
        grid_spec=pltpu.PrefetchScalarGridSpec(
            num_scalar_prefetch=0,
            grid=(2, nb),
            in_specs=[
                pl.BlockSpec((B, 1), lambda d, i: (0, 0)),           # lengths
                pl.BlockSpec((None, ts, B, G), time_idx),            # x-gates
                pl.BlockSpec((None, H, G), lambda d, i: (d, 0, 0)),  # W_hh^T
            ],
            out_specs=pl.BlockSpec((None, ts, B, H), time_idx),
            scratch_shapes=[pltpu.VMEM((B, H), jnp.float32),         # h state
                            pltpu.VMEM((B, H), jnp.float32)],        # c state
        ),
        compiler_params=pltpu.CompilerParams(
            dimension_semantics=("parallel", "arbitrary"),
            vmem_limit_bytes=_VMEM_LIMIT),
    )(lengths_col, gx, whh)


# ------------------- tiled Linear + CRF-score kernel -------------------------

def _emission_crf_kernel(hf_ref, hb_ref, w1_ref, w2_ref, b_ref, trans_ref,
                         out_ref, *, out_size):
    # emission: (TILE_N, T) = h_f @ W1 + h_b @ W2 + b   (no concat needed)
    em = (jnp.dot(hf_ref[...], w1_ref[...], preferred_element_type=jnp.float32)
          + jnp.dot(hb_ref[...], w2_ref[...], preferred_element_type=jnp.float32)
          + b_ref[...])
    # Lane-dense CRF scores: out[n, i*T + j] = emission[n, j] + transition[i, j]
    out_ref[...] = jnp.tile(em, (1, out_size)) + trans_ref[...]


def emission_crf(hf_flat, hb_flat, w1, w2, blin, trans_flat):
    N, H = hf_flat.shape
    T = w1.shape[1]
    TT = trans_flat.shape[1]
    tile_n = _largest_divisor(N, (1024, 512, 256, 128, 64, 32, 16, 8))
    kernel = functools.partial(_emission_crf_kernel, out_size=T)
    return pl.pallas_call(
        kernel,
        out_shape=jax.ShapeDtypeStruct((N, TT), jnp.float32),
        grid_spec=pltpu.PrefetchScalarGridSpec(
            num_scalar_prefetch=0,
            grid=(N // tile_n,),
            in_specs=[
                pl.BlockSpec((tile_n, H), lambda n: (n, 0)),
                pl.BlockSpec((tile_n, H), lambda n: (n, 0)),
                # Constant-index inputs below are tiny (H*T, T, T*T floats).
                pl.BlockSpec((H, T), lambda n: (0, 0)),
                pl.BlockSpec((H, T), lambda n: (0, 0)),
                pl.BlockSpec((1, T), lambda n: (0, 0)),
                pl.BlockSpec((1, TT), lambda n: (0, 0)),
            ],
            out_specs=pl.BlockSpec((tile_n, TT), lambda n: (n, 0)),
        ),
        compiler_params=pltpu.CompilerParams(
            dimension_semantics=("parallel",),
            vmem_limit_bytes=_VMEM_LIMIT),
    )(hf_flat, hb_flat, w1, w2, blin, trans_flat)


# ------------------------------- Model ---------------------------------------

def init_params(key, vocab_size, emb_size, hidden_size, out_size):
    ks = jax.random.split(key, 12)
    H, E, T = hidden_size, emb_size, out_size
    s = 1.0 / float(H) ** 0.5
    sl = 1.0 / float(2 * H) ** 0.5
    u = lambda k, shape, sc: jax.random.uniform(k, shape, jnp.float32, -sc, sc)
    return {
        "embedding": jax.random.normal(ks[0], (vocab_size, E), jnp.float32),
        # per-direction LSTM weights, stored pre-transposed for the kernels
        "wih_f": u(ks[1], (E, 4 * H), s),
        "whh_f": u(ks[2], (H, 4 * H), s),
        "b_f": u(ks[3], (1, 4 * H), s) + u(ks[4], (1, 4 * H), s),   # b_ih+b_hh
        "wih_b": u(ks[5], (E, 4 * H), s),
        "whh_b": u(ks[6], (H, 4 * H), s),
        "b_b": u(ks[7], (1, 4 * H), s) + u(ks[8], (1, 4 * H), s),
        # Linear(2H -> T)
        "wlin_T": u(ks[9], (2 * H, T), sl),
        "blin": u(ks[10], (1, T), sl),
        # CRF transition = ones(T, T) / T
        "transition": jnp.ones((T, T), jnp.float32) / T,
    }


def bilstm_crf_forward(params, sents_tensor, lengths):
    """sents_tensor: (B, L) int32 token ids; lengths: (B,) int (descending)."""
    B, L = sents_tensor.shape
    H = params["whh_f"].shape[0]
    T = params["transition"].shape[0]

    # Embedding lookup straight into time-major layout (L, B, E): only the tiny
    # (B, L) int id tensor is transposed, never an activation tensor.
    emb_t = jnp.take(params["embedding"], sents_tensor.T, axis=0)

    # Hoisted input projection for BOTH directions as one batched matmul
    # (bf16 operands, f32 accumulation), producing (2, L, B, 4H) directly.
    wih = jnp.stack([params["wih_f"], params["wih_b"]])          # (2, E, 4H)
    bias = jnp.stack([params["b_f"], params["b_b"]])             # (2, 1, 4H)
    gx = jnp.einsum("lbe,deg->dlbg",
                    emb_t.astype(jnp.bfloat16), wih.astype(jnp.bfloat16),
                    preferred_element_type=jnp.float32)
    gx = gx + bias[:, :, None, :]                                # fold biases in

    whh = jnp.stack([params["whh_f"], params["whh_b"]]).astype(jnp.bfloat16)
    lengths_col = lengths.astype(jnp.int32).reshape(-1, 1)

    ts = _largest_divisor(L, (32, 16, 8, 4, 2))                  # timesteps/step
    h = bilstm_recurrence(gx, whh, lengths_col, ts=ts)           # (2, L, B, H)

    # Per-direction (B*L, H); the only remaining transposes are over the small
    # H-wide hidden states, never over the T*T-wide CRF output.
    h_bm = jnp.transpose(h, (0, 2, 1, 3)).reshape(2, B * L, H)
    w1 = params["wlin_T"][:H]                                    # fwd half
    w2 = params["wlin_T"][H:]                                    # bwd half
    trans_flat = params["transition"].reshape(1, T * T)

    # crf[b, l, i, j] = emission[b, l, j] + transition[i, j]  (same as PyTorch)
    crf_flat = emission_crf(h_bm[0], h_bm[1], w1, w2, params["blin"],
                            trans_flat)                          # (B*L, T*T)
    return crf_flat.reshape(B, L, T, T)


# ------------------------------- Main ----------------------------------------

if __name__ == "__main__":
    vocab_size, emb_size, hidden_size, out_size = 16, 8, 16, 8
    B, L = 2, 8

    key = jax.random.PRNGKey(0)
    k_param, k_tok = jax.random.split(key)

    params = init_params(k_param, vocab_size, emb_size, hidden_size, out_size)
    sents = jax.random.randint(k_tok, (B, L), 0, vocab_size, dtype=jnp.int32)
    # pack_padded_sequence requires descending lengths; max length == L so the
    # padded output length matches L.
    lengths = jnp.array([L, L - 2], dtype=jnp.int32)

    fwd = jax.jit(bilstm_crf_forward)
    crf_scores = jax.block_until_ready(fwd(params, sents, lengths))

    assert crf_scores.shape == (B, L, out_size, out_size)
    assert crf_scores.dtype == jnp.float32
    assert bool(jnp.all(jnp.isfinite(crf_scores)))
    print("KERNEL_OK")
</pallas_src>

<mosaic_0001>
module attributes {stable_mosaic.version = 11 : i64} {
  func.func @_emission_crf_kernel(%arg0: i32, %arg1: memref<16x16xf32, #tpu.memory_space<vmem>>, %arg2: memref<16x16xf32, #tpu.memory_space<vmem>>, %arg3: memref<16x8xf32, #tpu.memory_space<vmem>>, %arg4: memref<16x8xf32, #tpu.memory_space<vmem>>, %arg5: memref<1x8xf32, #tpu.memory_space<vmem>>, %arg6: memref<1x64xf32, #tpu.memory_space<vmem>>, %arg7: memref<16x64xf32, #tpu.memory_space<vmem>>) attributes {dimension_semantics = [#tpu.dimension_semantics<parallel>], iteration_bounds = array<i64: 1>, scalar_prefetch = 0 : i64, scratch_operands = 0 : i64, tpu.core_type = #tpu.core_type<tc>, window_params = [{transform_indices = @transform_0, window_bounds = array<i64: 16, 16>}, {transform_indices = @transform_1, window_bounds = array<i64: 16, 16>}, {pipeline_mode = #tpu.pipeline_mode<synchronous>, transform_indices = @transform_2, window_bounds = array<i64: 16, 8>}, {pipeline_mode = #tpu.pipeline_mode<synchronous>, transform_indices = @transform_3, window_bounds = array<i64: 16, 8>}, {pipeline_mode = #tpu.pipeline_mode<synchronous>, transform_indices = @transform_4, window_bounds = array<i64: 1, 8>}, {pipeline_mode = #tpu.pipeline_mode<synchronous>, transform_indices = @transform_5, window_bounds = array<i64: 1, 64>}, {transform_indices = @transform_6, window_bounds = array<i64: 16, 64>}]} {
    %c0 = arith.constant 0 : index
    %c0_0 = arith.constant 0 : index
    %0 = vector.load %arg1[%c0, %c0_0] : memref<16x16xf32, #tpu.memory_space<vmem>>, vector<16x16xf32>
    %c0_1 = arith.constant 0 : index
    %c0_2 = arith.constant 0 : index
    %1 = vector.load %arg3[%c0_1, %c0_2] : memref<16x8xf32, #tpu.memory_space<vmem>>, vector<16x8xf32>
    %cst = arith.constant dense<0.000000e+00> : vector<16x8xf32>
    %2 = tpu.matmul %0, %1, %cst {dimension_numbers = #tpu.dot_dimension_numbers<[1], [0], [0], [1], [0, 0, 1, 1], [], []>} : vector<16x16xf32>, vector<16x8xf32>, vector<16x8xf32> -> vector<16x8xf32>
    %c0_3 = arith.constant 0 : index
    %c0_4 = arith.constant 0 : index
    %3 = vector.load %arg2[%c0_3, %c0_4] : memref<16x16xf32, #tpu.memory_space<vmem>>, vector<16x16xf32>
    %c0_5 = arith.constant 0 : index
    %c0_6 = arith.constant 0 : index
    %4 = vector.load %arg4[%c0_5, %c0_6] : memref<16x8xf32, #tpu.memory_space<vmem>>, vector<16x8xf32>
    %cst_7 = arith.constant dense<0.000000e+00> : vector<16x8xf32>
    %5 = tpu.matmul %3, %4, %cst_7 {dimension_numbers = #tpu.dot_dimension_numbers<[1], [0], [0], [1], [0, 0, 1, 1], [], []>} : vector<16x16xf32>, vector<16x8xf32>, vector<16x8xf32> -> vector<16x8xf32>
    %6 = arith.addf %2, %5 : vector<16x8xf32>
    %c0_8 = arith.constant 0 : index
    %c0_9 = arith.constant 0 : index
    %7 = vector.load %arg5[%c0_8, %c0_9] : memref<1x8xf32, #tpu.memory_space<vmem>>, vector<1x8xf32>
    %8 = vector.broadcast %7 : vector<1x8xf32> to vector<16x8xf32>
    %9 = arith.addf %6, %8 : vector<16x8xf32>
    %10 = tpu.concatenate %9, %9, %9, %9, %9, %9, %9, %9 in 1 : vector<16x8xf32>, vector<16x8xf32>, vector<16x8xf32>, vector<16x8xf32>, vector<16x8xf32>, vector<16x8xf32>, vector<16x8xf32>, vector<16x8xf32> -> vector<16x64xf32>
    %c0_10 = arith.constant 0 : index
    %c0_11 = arith.constant 0 : index
    %11 = vector.load %arg6[%c0_10, %c0_11] : memref<1x64xf32, #tpu.memory_space<vmem>>, vector<1x64xf32>
    %12 = vector.broadcast %11 : vector<1x64xf32> to vector<16x64xf32>
    %13 = arith.addf %10, %12 : vector<16x64xf32>
    %c0_12 = arith.constant 0 : index
    %c0_13 = arith.constant 0 : index
    %14 = vector.load %arg7[%c0_12, %c0_13] : memref<16x64xf32, #tpu.memory_space<vmem>>, vector<16x64xf32>
    tpu.vector_store %arg7[%c0_12, %c0_13], %13 {strides = array<i32>} : memref<16x64xf32, #tpu.memory_space<vmem>>, vector<16x64xf32>,
    return
  }
  func.func @transform_0(%arg0: i32) -> (i32, i32) {
    %c0_i32 = arith.constant 0 : i32
    %c0_i32_0 = arith.constant 0 : i32
    return %arg0, %c0_i32 : i32, i32
  }
  func.func @transform_1(%arg0: i32) -> (i32, i32) {
    %c0_i32 = arith.constant 0 : i32
    %c0_i32_0 = arith.constant 0 : i32
    return %arg0, %c0_i32 : i32, i32
  }
  func.func @transform_2(%arg0: i32) -> (i32, i32) {
    %c0_i32 = arith.constant 0 : i32
    %c0_i32_0 = arith.constant 0 : i32
    %c0_i32_1 = arith.constant 0 : i32
    return %c0_i32, %c0_i32_0 : i32, i32
  }
  func.func @transform_3(%arg0: i32) -> (i32, i32) {
    %c0_i32 = arith.constant 0 : i32
    %c0_i32_0 = arith.constant 0 : i32
    %c0_i32_1 = arith.constant 0 : i32
    return %c0_i32, %c0_i32_0 : i32, i32
  }
  func.func @transform_4(%arg0: i32) -> (i32, i32) {
    %c0_i32 = arith.constant 0 : i32
    %c0_i32_0 = arith.constant 0 : i32
    %c0_i32_1 = arith.constant 0 : i32
    return %c0_i32, %c0_i32_0 : i32, i32
  }
  func.func @transform_5(%arg0: i32) -> (i32, i32) {
    %c0_i32 = arith.constant 0 : i32
    %c0_i32_0 = arith.constant 0 : i32
    %c0_i32_1 = arith.constant 0 : i32
    return %c0_i32, %c0_i32_0 : i32, i32
  }
  func.func @transform_6(%arg0: i32) -> (i32, i32) {
    %c0_i32 = arith.constant 0 : i32
    %c0_i32_0 = arith.constant 0 : i32
    return %arg0, %c0_i32 : i32, i32
  }
}

module attributes {stable_mosaic.version = 11 : i64} {
  func.func @_bilstm_kernel(%arg0: i32, %arg1: i32, %arg2: memref<2x1xi32, #tpu.memory_space<vmem>>, %arg3: memref<1x8x2x64xf32, #tpu.memory_space<vmem>>, %arg4: memref<1x16x64xbf16, #tpu.memory_space<vmem>>, %arg5: memref<1x8x2x16xf32, #tpu.memory_space<vmem>>, %arg6: memref<2x16xf32, #tpu.memory_space<vmem>>, %arg7: memref<2x16xf32, #tpu.memory_space<vmem>>) attributes {dimension_semantics = [#tpu.dimension_semantics<parallel>, #tpu.dimension_semantics<arbitrary>], iteration_bounds = array<i64: 2, 1>, scalar_prefetch = 0 : i64, scratch_operands = 2 : i64, tpu.core_type = #tpu.core_type<tc>, window_params = [{pipeline_mode = #tpu.pipeline_mode<synchronous>, transform_indices = @transform_0, window_bounds = array<i64: 2, 1>}, {transform_indices = @transform_1, window_bounds = array<i64: 1, 8, 2, 64>}, {transform_indices = @transform_2, window_bounds = array<i64: 1, 16, 64>}, {transform_indices = @transform_3, window_bounds = array<i64: 1, 8, 2, 16>}]} {
    %c0_i32 = arith.constant 0 : i32
    %0 = arith.cmpi eq, %arg1, %c0_i32 : i32
    %1 = arith.extui %0 : i1 to i32
    %c0_i32_0 = arith.constant 0 : i32
    %2 = arith.cmpi ne, %1, %c0_i32_0 : i32
    scf.if %2 {
      %cst_120 = arith.constant 0.000000e+00 : f32
      %440 = vector.broadcast %cst_120 : f32 to vector<2x16xf32>
      %c0_121 = arith.constant 0 : index
      %c0_122 = arith.constant 0 : index
      %441 = vector.load %arg6[%c0_121, %c0_122] : memref<2x16xf32, #tpu.memory_space<vmem>>, vector<2x16xf32>
      tpu.vector_store %arg6[%c0_121, %c0_122], %440 {strides = array<i32>} : memref<2x16xf32, #tpu.memory_space<vmem>>, vector<2x16xf32>,
      %cst_123 = arith.constant 0.000000e+00 : f32
      %442 = vector.broadcast %cst_123 : f32 to vector<2x16xf32>
      %c0_124 = arith.constant 0 : index
      %c0_125 = arith.constant 0 : index
      %443 = vector.load %arg7[%c0_124, %c0_125] : memref<2x16xf32, #tpu.memory_space<vmem>>, vector<2x16xf32>
      tpu.vector_store %arg7[%c0_124, %c0_125], %442 {strides = array<i32>} : memref<2x16xf32, #tpu.memory_space<vmem>>, vector<2x16xf32>,
    } else {
    }
    %c0 = arith.constant 0 : index
    %c0_1 = arith.constant 0 : index
    %3 = vector.load %arg2[%c0, %c0_1] : memref<2x1xi32, #tpu.memory_space<vmem>>, vector<2x1xi32>
    %c0_2 = arith.constant 0 : index
    %c0_3 = arith.constant 0 : index
    %c0_4 = arith.constant 0 : index
    %4 = vector.load %arg4[%c0_2, %c0_3, %c0_4] : memref<1x16x64xbf16, #tpu.memory_space<vmem>>, vector<1x16x64xbf16>
    %5 = vector.shape_cast %4 : vector<1x16x64xbf16> to vector<16x64xbf16>
    %c1_i32 = arith.constant 1 : i32
    %6 = arith.subi %c1_i32, %arg0 : i32
    %7 = arith.muli %arg1, %6 : i32
    %c0_i32_5 = arith.constant 0 : i32
    %8 = arith.subi %c0_i32_5, %arg1 : i32
    %9 = arith.muli %8, %arg0 : i32
    %10 = arith.addi %7, %9 : i32
    %c8_i32 = arith.constant 8 : i32
    %11 = arith.muli %10, %c8_i32 : i32
    %c0_6 = arith.constant 0 : index
    %c0_7 = arith.constant 0 : index
    %12 = vector.load %arg6[%c0_6, %c0_7] : memref<2x16xf32, #tpu.memory_space<vmem>>, vector<2x16xf32>
    %c0_8 = arith.constant 0 : index
    %c0_9 = arith.constant 0 : index
    %13 = vector.load %arg7[%c0_8, %c0_9] : memref<2x16xf32, #tpu.memory_space<vmem>>, vector<2x16xf32>
    %c0_i32_10 = arith.constant 0 : i32
    %c1_i32_11 = arith.constant 1 : i32
    %14 = arith.subi %c1_i32_11, %arg0 : i32
    %15 = arith.muli %c0_i32_10, %14 : i32
    %c7_i32 = arith.constant 7 : i32
    %16 = arith.subi %c7_i32, %c0_i32_10 : i32
    %17 = arith.muli %16, %arg0 : i32
    %18 = arith.addi %15, %17 : i32
    %19 = arith.addi %11, %18 : i32
    %c0_12 = arith.constant 0 : index
    %20 = arith.index_cast %18 : i32 to index
    %c0_13 = arith.constant 0 : index
    %c0_14 = arith.constant 0 : index
    %21 = vector.load %arg3[%c0_12, %20, %c0_13, %c0_14] : memref<1x8x2x64xf32, #tpu.memory_space<vmem>>, vector<1x1x2x64xf32>
    %22 = vector.shape_cast %21 : vector<1x1x2x64xf32> to vector<2x64xf32>
    %23 = arith.truncf %12 : vector<2x16xf32> to vector<2x16xbf16>
    %cst = arith.constant dense<0.000000e+00> : vector<2x64xf32>
    %24 = tpu.matmul %23, %5, %cst {dimension_numbers = #tpu.dot_dimension_numbers<[1], [0], [0], [1], [0, 0, 1, 1], [], []>} : vector<2x16xbf16>, vector<16x64xbf16>, vector<2x64xf32> -> vector<2x64xf32>
    %25 = arith.addf %22, %24 : vector<2x64xf32>
    %26 = vector.extract_strided_slice %25 {offsets = [0, 0], sizes = [2, 16], strides = [1, 1]} : vector<2x64xf32> to vector<2x16xf32>
    %27 = arith.negf %26 : vector<2x16xf32>
    %28 = math.exp %27 : vector<2x16xf32>
    %cst_15 = arith.constant 1.000000e+00 : f32
    %29 = vector.broadcast %cst_15 : f32 to vector<2x16xf32>
    %30 = arith.addf %29, %28 : vector<2x16xf32>
    %31 = arith.divf %29, %30 : vector<2x16xf32>
    %32 = vector.extract_strided_slice %25 {offsets = [0, 16], sizes = [2, 16], strides = [1, 1]} : vector<2x64xf32> to vector<2x16xf32>
    %33 = arith.negf %32 : vector<2x16xf32>
    %34 = math.exp %33 : vector<2x16xf32>
    %cst_16 = arith.constant 1.000000e+00 : f32
    %35 = vector.broadcast %cst_16 : f32 to vector<2x16xf32>
    %36 = arith.addf %35, %34 : vector<2x16xf32>
    %37 = arith.divf %35, %36 : vector<2x16xf32>
    %38 = vector.extract_strided_slice %25 {offsets = [0, 32], sizes = [2, 16], strides = [1, 1]} : vector<2x64xf32> to vector<2x16xf32>
    %39 = math.tanh %38 : vector<2x16xf32>
    %40 = vector.extract_strided_slice %25 {offsets = [0, 48], sizes = [2, 16], strides = [1, 1]} : vector<2x64xf32> to vector<2x16xf32>
    %41 = arith.negf %40 : vector<2x16xf32>
    %42 = math.exp %41 : vector<2x16xf32>
    %cst_17 = arith.constant 1.000000e+00 : f32
    %43 = vector.broadcast %cst_17 : f32 to vector<2x16xf32>
    %44 = arith.addf %43, %42 : vector<2x16xf32>
    %45 = arith.divf %43, %44 : vector<2x16xf32>
    %46 = arith.mulf %37, %13 : vector<2x16xf32>
    %47 = arith.mulf %31, %39 : vector<2x16xf32>
    %48 = arith.addf %46, %47 : vector<2x16xf32>
    %49 = math.tanh %48 : vector<2x16xf32>
    %50 = arith.mulf %45, %49 : vector<2x16xf32>
    %51 = vector.broadcast %19 : i32 to vector<2x1xi32>
    %52 = arith.cmpi sgt, %3, %51 : vector<2x1xi32>
    %cst_18 = arith.constant 0.000000e+00 : f32
    %53 = vector.broadcast %cst_18 : f32 to vector<2x16xf32>
    %54 = vector.shape_cast %52 : vector<2x1xi1> to vector<2x1xi1>
    %55 = vector.broadcast %54 : vector<2x1xi1> to vector<2x16xi1>
    %56 = arith.select %55, %50, %53 : vector<2x16xi1>, vector<2x16xf32>
    %c0_19 = arith.constant 0 : index
    %57 = arith.index_cast %18 : i32 to index
    %c0_20 = arith.constant 0 : index
    %c0_21 = arith.constant 0 : index
    %58 = vector.load %arg5[%c0_19, %57, %c0_20, %c0_21] : memref<1x8x2x16xf32, #tpu.memory_space<vmem>>, vector<1x1x2x16xf32>
    %59 = vector.shape_cast %58 : vector<1x1x2x16xf32> to vector<2x16xf32>
    %60 = vector.shape_cast %56 : vector<2x16xf32> to vector<1x1x2x16xf32>
    tpu.vector_store %arg5[%c0_19, %57, %c0_20, %c0_21], %60 {strides = array<i32>} : memref<1x8x2x16xf32, #tpu.memory_space<vmem>>, vector<1x1x2x16xf32>,
    %61 = vector.shape_cast %52 : vector<2x1xi1> to vector<2x1xi1>
    %62 = vector.broadcast %61 : vector<2x1xi1> to vector<2x16xi1>
    %63 = arith.select %62, %50, %12 : vector<2x16xi1>, vector<2x16xf32>
    %64 = vector.shape_cast %52 : vector<2x1xi1> to vector<2x1xi1>
    %65 = vector.broadcast %64 : vector<2x1xi1> to vector<2x16xi1>
    %66 = arith.select %65, %48, %13 : vector<2x16xi1>, vector<2x16xf32>
    %c1_i32_22 = arith.constant 1 : i32
    %c1_i32_23 = arith.constant 1 : i32
    %67 = arith.subi %c1_i32_23, %arg0 : i32
    %68 = arith.muli %c1_i32_22, %67 : i32
    %c7_i32_24 = arith.constant 7 : i32
    %69 = arith.subi %c7_i32_24, %c1_i32_22 : i32
    %70 = arith.muli %69, %arg0 : i32
    %71 = arith.addi %68, %70 : i32
    %72 = arith.addi %11, %71 : i32
    %c0_25 = arith.constant 0 : index
    %73 = arith.index_cast %71 : i32 to index
    %c0_26 = arith.constant 0 : index
    %c0_27 = arith.constant 0 : index
    %74 = vector.load %arg3[%c0_25, %73, %c0_26, %c0_27] : memref<1x8x2x64xf32, #tpu.memory_space<vmem>>, vector<1x1x2x64xf32>
    %75 = vector.shape_cast %74 : vector<1x1x2x64xf32> to vector<2x64xf32>
    %76 = arith.truncf %63 : vector<2x16xf32> to vector<2x16xbf16>
    %cst_28 = arith.constant dense<0.000000e+00> : vector<2x64xf32>
    %77 = tpu.matmul %76, %5, %cst_28 {dimension_numbers = #tpu.dot_dimension_numbers<[1], [0], [0], [1], [0, 0, 1, 1], [], []>} : vector<2x16xbf16>, vector<16x64xbf16>, vector<2x64xf32> -> vector<2x64xf32>
    %78 = arith.addf %75, %77 : vector<2x64xf32>
    %79 = vector.extract_strided_slice %78 {offsets = [0, 0], sizes = [2, 16], strides = [1, 1]} : vector<2x64xf32> to vector<2x16xf32>
    %80 = arith.negf %79 : vector<2x16xf32>
    %81 = math.exp %80 : vector<2x16xf32>
    %cst_29 = arith.constant 1.000000e+00 : f32
    %82 = vector.broadcast %cst_29 : f32 to vector<2x16xf32>
    %83 = arith.addf %82, %81 : vector<2x16xf32>
    %84 = arith.divf %82, %83 : vector<2x16xf32>
    %85 = vector.extract_strided_slice %78 {offsets = [0, 16], sizes = [2, 16], strides = [1, 1]} : vector<2x64xf32> to vector<2x16xf32>
    %86 = arith.negf %85 : vector<2x16xf32>
    %87 = math.exp %86 : vector<2x16xf32>
    %cst_30 = arith.constant 1.000000e+00 : f32
    %88 = vector.broadcast %cst_30 : f32 to vector<2x16xf32>
    %89 = arith.addf %88, %87 : vector<2x16xf32>
    %90 = arith.divf %88, %89 : vector<2x16xf32>
    %91 = vector.extract_strided_slice %78 {offsets = [0, 32], sizes = [2, 16], strides = [1, 1]} : vector<2x64xf32> to vector<2x16xf32>
    %92 = math.tanh %91 : vector<2x16xf32>
    %93 = vector.extract_strided_slice %78 {offsets = [0, 48], sizes = [2, 16], strides = [1, 1]} : vector<2x64xf32> to vector<2x16xf32>
    %94 = arith.negf %93 : vector<2x16xf32>
    %95 = math.exp %94 : vector<2x16xf32>
    %cst_31 = arith.constant 1.000000e+00 : f32
    %96 = vector.broadcast %cst_31 : f32 to vector<2x16xf32>
    %97 = arith.addf %96, %95 : vector<2x16xf32>
    %98 = arith.divf %96, %97 : vector<2x16xf32>
    %99 = arith.mulf %90, %66 : vector<2x16xf32>
    %100 = arith.mulf %84, %92 : vector<2x16xf32>
    %101 = arith.addf %99, %100 : vector<2x16xf32>
    %102 = math.tanh %101 : vector<2x16xf32>
    %103 = arith.mulf %98, %102 : vector<2x16xf32>
    %104 = vector.broadcast %72 : i32 to vector<2x1xi32>
    %105 = arith.cmpi sgt, %3, %104 : vector<2x1xi32>
    %cst_32 = arith.constant 0.000000e+00 : f32
    %106 = vector.broadcast %cst_32 : f32 to vector<2x16xf32>
    %107 = vector.shape_cast %105 : vector<2x1xi1> to vector<2x1xi1>
    %108 = vector.broadcast %107 : vector<2x1xi1> to vector<2x16xi1>
    %109 = arith.select %108, %103, %106 : vector<2x16xi1>, vector<2x16xf32>
    %c0_33 = arith.constant 0 : index
    %110 = arith.index_cast %71 : i32 to index
    %c0_34 = arith.constant 0 : index
    %c0_35 = arith.constant 0 : index
    %111 = vector.load %arg5[%c0_33, %110, %c0_34, %c0_35] : memref<1x8x2x16xf32, #tpu.memory_space<vmem>>, vector<1x1x2x16xf32>
    %112 = vector.shape_cast %111 : vector<1x1x2x16xf32> to vector<2x16xf32>
    %113 = vector.shape_cast %109 : vector<2x16xf32> to vector<1x1x2x16xf32>
    tpu.vector_store %arg5[%c0_33, %110, %c0_34, %c0_35], %113 {strides = array<i32>} : memref<1x8x2x16xf32, #tpu.memory_space<vmem>>, vector<1x1x2x16xf32>,
    %114 = vector.shape_cast %105 : vector<2x1xi1> to vector<2x1xi1>
    %115 = vector.broadcast %114 : vector<2x1xi1> to vector<2x16xi1>
    %116 = arith.select %115, %103, %63 : vector<2x16xi1>, vector<2x16xf32>
    %117 = vector.shape_cast %105 : vector<2x1xi1> to vector<2x1xi1>
    %118 = vector.broadcast %117 : vector<2x1xi1> to vector<2x16xi1>
    %119 = arith.select %118, %101, %66 : vector<2x16xi1>, vector<2x16xf32>
    %c2_i32 = arith.constant 2 : i32
    %c1_i32_36 = arith.constant 1 : i32
    %120 = arith.subi %c1_i32_36, %arg0 : i32
    %121 = arith.muli %c2_i32, %120 : i32
    %c7_i32_37 = arith.constant 7 : i32
    %122 = arith.subi %c7_i32_37, %c2_i32 : i32
    %123 = arith.muli %122, %arg0 : i32
    %124 = arith.addi %121, %123 : i32
    %125 = arith.addi %11, %124 : i32
    %c0_38 = arith.constant 0 : index
    %126 = arith.index_cast %124 : i32 to index
    %c0_39 = arith.constant 0 : index
    %c0_40 = arith.constant 0 : index
    %127 = vector.load %arg3[%c0_38, %126, %c0_39, %c0_40] : memref<1x8x2x64xf32, #tpu.memory_space<vmem>>, vector<1x1x2x64xf32>
    %128 = vector.shape_cast %127 : vector<1x1x2x64xf32> to vector<2x64xf32>
    %129 = arith.truncf %116 : vector<2x16xf32> to vector<2x16xbf16>
    %cst_41 = arith.constant dense<0.000000e+00> : vector<2x64xf32>
    %130 = tpu.matmul %129, %5, %cst_41 {dimension_numbers = #tpu.dot_dimension_numbers<[1], [0], [0], [1], [0, 0, 1, 1], [], []>} : vector<2x16xbf16>, vector<16x64xbf16>, vector<2x64xf32> -> vector<2x64xf32>
    %131 = arith.addf %128, %130 : vector<2x64xf32>
    %132 = vector.extract_strided_slice %131 {offsets = [0, 0], sizes = [2, 16], strides = [1, 1]} : vector<2x64xf32> to vector<2x16xf32>
    %133 = arith.negf %132 : vector<2x16xf32>
    %134 = math.exp %133 : vector<2x16xf32>
    %cst_42 = arith.constant 1.000000e+00 : f32
    %135 = vector.broadcast %cst_42 : f32 to vector<2x16xf32>
    %136 = arith.addf %135, %134 : vector<2x16xf32>
    %137 = arith.divf %135, %136 : vector<2x16xf32>
    %138 = vector.extract_strided_slice %131 {offsets = [0, 16], sizes = [2, 16], strides = [1, 1]} : vector<2x64xf32> to vector<2x16xf32>
    %139 = arith.negf %138 : vector<2x16xf32>
    %140 = math.exp %139 : vector<2x16xf32>
    %cst_43 = arith.constant 1.000000e+00 : f32
    %141 = vector.broadcast %cst_43 : f32 to vector<2x16xf32>
    %142 = arith.addf %141, %140 : vector<2x16xf32>
    %143 = arith.divf %141, %142 : vector<2x16xf32>
    %144 = vector.extract_strided_slice %131 {offsets = [0, 32], sizes = [2, 16], strides = [1, 1]} : vector<2x64xf32> to vector<2x16xf32>
    %145 = math.tanh %144 : vector<2x16xf32>
    %146 = vector.extract_strided_slice %131 {offsets = [0, 48], sizes = [2, 16], strides = [1, 1]} : vector<2x64xf32> to vector<2x16xf32>
    %147 = arith.negf %146 : vector<2x16xf32>
    %148 = math.exp %147 : vector<2x16xf32>
    %cst_44 = arith.constant 1.000000e+00 : f32
    %149 = vector.broadcast %cst_44 : f32 to vector<2x16xf32>
    %150 = arith.addf %149, %148 : vector<2x16xf32>
    %151 = arith.divf %149, %150 : vector<2x16xf32>
    %152 = arith.mulf %143, %119 : vector<2x16xf32>
    %153 = arith.mulf %137, %145 : vector<2x16xf32>
    %154 = arith.addf %152, %153 : vector<2x16xf32>
    %155 = math.tanh %154 : vector<2x16xf32>
    %156 = arith.mulf %151, %155 : vector<2x16xf32>
    %157 = vector.broadcast %125 : i32 to vector<2x1xi32>
    %158 = arith.cmpi sgt, %3, %157 : vector<2x1xi32>
    %cst_45 = arith.constant 0.000000e+00 : f32
    %159 = vector.broadcast %cst_45 : f32 to vector<2x16xf32>
    %160 = vector.shape_cast %158 : vector<2x1xi1> to vector<2x1xi1>
    %161 = vector.broadcast %160 : vector<2x1xi1> to vector<2x16xi1>
    %162 = arith.select %161, %156, %159 : vector<2x16xi1>, vector<2x16xf32>
    %c0_46 = arith.constant 0 : index
    %163 = arith.index_cast %124 : i32 to index
    %c0_47 = arith.constant 0 : index
    %c0_48 = arith.constant 0 : index
    %164 = vector.load %arg5[%c0_46, %163, %c0_47, %c0_48] : memref<1x8x2x16xf32, #tpu.memory_space<vmem>>, vector<1x1x2x16xf32>
    %165 = vector.shape_cast %164 : vector<1x1x2x16xf32> to vector<2x16xf32>
    %166 = vector.shape_cast %162 : vector<2x16xf32> to vector<1x1x2x16xf32>
    tpu.vector_store %arg5[%c0_46, %163, %c0_47, %c0_48], %166 {strides = array<i32>} : memref<1x8x2x16xf32, #tpu.memory_space<vmem>>, vector<1x1x2x16xf32>,
    %167 = vector.shape_cast %158 : vector<2x1xi1> to vector<2x1xi1>
    %168 = vector.broadcast %167 : vector<2x1xi1> to vector<2x16xi1>
    %169 = arith.select %168, %156, %116 : vector<2x16xi1>, vector<2x16xf32>
    %170 = vector.shape_cast %158 : vector<2x1xi1> to vector<2x1xi1>
    %171 = vector.broadcast %170 : vector<2x1xi1> to vector<2x16xi1>
    %172 = arith.select %171, %154, %119 : vector<2x16xi1>, vector<2x16xf32>
    %c3_i32 = arith.constant 3 : i32
    %c1_i32_49 = arith.constant 1 : i32
    %173 = arith.subi %c1_i32_49, %arg0 : i32
    %174 = arith.muli %c3_i32, %173 : i32
    %c7_i32_50 = arith.constant 7 : i32
    %175 = arith.subi %c7_i32_50, %c3_i32 : i32
    %176 = arith.muli %175, %arg0 : i32
    %177 = arith.addi %174, %176 : i32
    %178 = arith.addi %11, %177 : i32
    %c0_51 = arith.constant 0 : index
    %179 = arith.index_cast %177 : i32 to index
    %c0_52 = arith.constant 0 : index
    %c0_53 = arith.constant 0 : index
    %180 = vector.load %arg3[%c0_51, %179, %c0_52, %c0_53] : memref<1x8x2x64xf32, #tpu.memory_space<vmem>>, vector<1x1x2x64xf32>
    %181 = vector.shape_cast %180 : vector<1x1x2x64xf32> to vector<2x64xf32>
    %182 = arith.truncf %169 : vector<2x16xf32> to vector<2x16xbf16>
    %cst_54 = arith.constant dense<0.000000e+00> : vector<2x64xf32>
    %183 = tpu.matmul %182, %5, %cst_54 {dimension_numbers = #tpu.dot_dimension_numbers<[1], [0], [0], [1], [0, 0, 1, 1], [], []>} : vector<2x16xbf16>, vector<16x64xbf16>, vector<2x64xf32> -> vector<2x64xf32>
    %184 = arith.addf %181, %183 : vector<2x64xf32>
    %185 = vector.extract_strided_slice %184 {offsets = [0, 0], sizes = [2, 16], strides = [1, 1]} : vector<2x64xf32> to vector<2x16xf32>
    %186 = arith.negf %185 : vector<2x16xf32>
    %187 = math.exp %186 : vector<2x16xf32>
    %cst_55 = arith.constant 1.000000e+00 : f32
    %188 = vector.broadcast %cst_55 : f32 to vector<2x16xf32>
    %189 = arith.addf %188, %187 : vector<2x16xf32>
    %190 = arith.divf %188, %189 : vector<2x16xf32>
    %191 = vector.extract_strided_slice %184 {offsets = [0, 16], sizes = [2, 16], strides = [1, 1]} : vector<2x64xf32> to vector<2x16xf32>
    %192 = arith.negf %191 : vector<2x16xf32>
    %193 = math.exp %192 : vector<2x16xf32>
    %cst_56 = arith.constant 1.000000e+00 : f32
    %194 = vector.broadcast %cst_56 : f32 to vector<2x16xf32>
    %195 = arith.addf %194, %193 : vector<2x16xf32>
    %196 = arith.divf %194, %195 : vector<2x16xf32>
    %197 = vector.extract_strided_slice %184 {offsets = [0, 32], sizes = [2, 16], strides = [1, 1]} : vector<2x64xf32> to vector<2x16xf32>
    %198 = math.tanh %197 : vector<2x16xf32>
    %199 = vector.extract_strided_slice %184 {offsets = [0, 48], sizes = [2, 16], strides = [1, 1]} : vector<2x64xf32> to vector<2x16xf32>
    %200 = arith.negf %199 : vector<2x16xf32>
    %201 = math.exp %200 : vector<2x16xf32>
    %cst_57 = arith.constant 1.000000e+00 : f32
    %202 = vector.broadcast %cst_57 : f32 to vector<2x16xf32>
    %203 = arith.addf %202, %201 : vector<2x16xf32>
    %204 = arith.divf %202, %203 : vector<2x16xf32>
    %205 = arith.mulf %196, %172 : vector<2x16xf32>
    %206 = arith.mulf %190, %198 : vector<2x16xf32>
    %207 = arith.addf %205, %206 : vector<2x16xf32>
    %208 = math.tanh %207 : vector<2x16xf32>
    %209 = arith.mulf %204, %208 : vector<2x16xf32>
    %210 = vector.broadcast %178 : i32 to vector<2x1xi32>
    %211 = arith.cmpi sgt, %3, %210 : vector<2x1xi32>
    %cst_58 = arith.constant 0.000000e+00 : f32
    %212 = vector.broadcast %cst_58 : f32 to vector<2x16xf32>
    %213 = vector.shape_cast %211 : vector<2x1xi1> to vector<2x1xi1>
    %214 = vector.broadcast %213 : vector<2x1xi1> to vector<2x16xi1>
    %215 = arith.select %214, %209, %212 : vector<2x16xi1>, vector<2x16xf32>
    %c0_59 = arith.constant 0 : index
    %216 = arith.index_cast %177 : i32 to index
    %c0_60 = arith.constant 0 : index
    %c0_61 = arith.constant 0 : index
    %217 = vector.load %arg5[%c0_59, %216, %c0_60, %c0_61] : memref<1x8x2x16xf32, #tpu.memory_space<vmem>>, vector<1x1x2x16xf32>
    %218 = vector.shape_cast %217 : vector<1x1x2x16xf32> to vector<2x16xf32>
    %219 = vector.shape_cast %215 : vector<2x16xf32> to vector<1x1x2x16xf32>
    tpu.vector_store %arg5[%c0_59, %216, %c0_60, %c0_61], %219 {strides = array<i32>} : memref<1x8x2x16xf32, #tpu.memory_space<vmem>>, vector<1x1x2x16xf32>,
    %220 = vector.shape_cast %211 : vector<2x1xi1> to vector<2x1xi1>
    %221 = vector.broadcast %220 : vector<2x1xi1> to vector<2x16xi1>
    %222 = arith.select %221, %209, %169 : vector<2x16xi1>, vector<2x16xf32>
    %223 = vector.shape_cast %211 : vector<2x1xi1> to vector<2x1xi1>
    %224 = vector.broadcast %223 : vector<2x1xi1> to vector<2x16xi1>
    %225 = arith.select %224, %207, %172 : vector<2x16xi1>, vector<2x16xf32>
    %c4_i32 = arith.constant 4 : i32
    %c1_i32_62 = arith.constant 1 : i32
    %226 = arith.subi %c1_i32_62, %arg0 : i32
    %227 = arith.muli %c4_i32, %226 : i32
    %c7_i32_63 = arith.constant 7 : i32
    %228 = arith.subi %c7_i32_63, %c4_i32 : i32
    %229 = arith.muli %228, %arg0 : i32
    %230 = arith.addi %227, %229 : i32
    %231 = arith.addi %11, %230 : i32
    %c0_64 = arith.constant 0 : index
    %232 = arith.index_cast %230 : i32 to index
    %c0_65 = arith.constant 0 : index
    %c0_66 = arith.constant 0 : index
    %233 = vector.load %arg3[%c0_64, %232, %c0_65, %c0_66] : memref<1x8x2x64xf32, #tpu.memory_space<vmem>>, vector<1x1x2x64xf32>
    %234 = vector.shape_cast %233 : vector<1x1x2x64xf32> to vector<2x64xf32>
    %235 = arith.truncf %222 : vector<2x16xf32> to vector<2x16xbf16>
    %cst_67 = arith.constant dense<0.000000e+00> : vector<2x64xf32>
    %236 = tpu.matmul %235, %5, %cst_67 {dimension_numbers = #tpu.dot_dimension_numbers<[1], [0], [0], [1], [0, 0, 1, 1], [], []>} : vector<2x16xbf16>, vector<16x64xbf16>, vector<2x64xf32> -> vector<2x64xf32>
    %237 = arith.addf %234, %236 : vector<2x64xf32>
    %238 = vector.extract_strided_slice %237 {offsets = [0, 0], sizes = [2, 16], strides = [1, 1]} : vector<2x64xf32> to vector<2x16xf32>
    %239 = arith.negf %238 : vector<2x16xf32>
    %240 = math.exp %239 : vector<2x16xf32>
    %cst_68 = arith.constant 1.000000e+00 : f32
    %241 = vector.broadcast %cst_68 : f32 to vector<2x16xf32>
    %242 = arith.addf %241, %240 : vector<2x16xf32>
    %243 = arith.divf %241, %242 : vector<2x16xf32>
    %244 = vector.extract_strided_slice %237 {offsets = [0, 16], sizes = [2, 16], strides = [1, 1]} : vector<2x64xf32> to vector<2x16xf32>
    %245 = arith.negf %244 : vector<2x16xf32>
    %246 = math.exp %245 : vector<2x16xf32>
    %cst_69 = arith.constant 1.000000e+00 : f32
    %247 = vector.broadcast %cst_69 : f32 to vector<2x16xf32>
    %248 = arith.addf %247, %246 : vector<2x16xf32>
    %249 = arith.divf %247, %248 : vector<2x16xf32>
    %250 = vector.extract_strided_slice %237 {offsets = [0, 32], sizes = [2, 16], strides = [1, 1]} : vector<2x64xf32> to vector<2x16xf32>
    %251 = math.tanh %250 : vector<2x16xf32>
    %252 = vector.extract_strided_slice %237 {offsets = [0, 48], sizes = [2, 16], strides = [1, 1]} : vector<2x64xf32> to vector<2x16xf32>
    %253 = arith.negf %252 : vector<2x16xf32>
    %254 = math.exp %253 : vector<2x16xf32>
    %cst_70 = arith.constant 1.000000e+00 : f32
    %255 = vector.broadcast %cst_70 : f32 to vector<2x16xf32>
    %256 = arith.addf %255, %254 : vector<2x16xf32>
    %257 = arith.divf %255, %256 : vector<2x16xf32>
    %258 = arith.mulf %249, %225 : vector<2x16xf32>
    %259 = arith.mulf %243, %251 : vector<2x16xf32>
    %260 = arith.addf %258, %259 : vector<2x16xf32>
    %261 = math.tanh %260 : vector<2x16xf32>
    %262 = arith.mulf %257, %261 : vector<2x16xf32>
    %263 = vector.broadcast %231 : i32 to vector<2x1xi32>
    %264 = arith.cmpi sgt, %3, %263 : vector<2x1xi32>
    %cst_71 = arith.constant 0.000000e+00 : f32
    %265 = vector.broadcast %cst_71 : f32 to vector<2x16xf32>
    %266 = vector.shape_cast %264 : vector<2x1xi1> to vector<2x1xi1>
    %267 = vector.broadcast %266 : vector<2x1xi1> to vector<2x16xi1>
    %268 = arith.select %267, %262, %265 : vector<2x16xi1>, vector<2x16xf32>
    %c0_72 = arith.constant 0 : index
    %269 = arith.index_cast %230 : i32 to index
    %c0_73 = arith.constant 0 : index
    %c0_74 = arith.constant 0 : index
    %270 = vector.load %arg5[%c0_72, %269, %c0_73, %c0_74] : memref<1x8x2x16xf32, #tpu.memory_space<vmem>>, vector<1x1x2x16xf32>
    %271 = vector.shape_cast %270 : vector<1x1x2x16xf32> to vector<2x16xf32>
    %272 = vector.shape_cast %268 : vector<2x16xf32> to vector<1x1x2x16xf32>
    tpu.vector_store %arg5[%c0_72, %269, %c0_73, %c0_74], %272 {strides = array<i32>} : memref<1x8x2x16xf32, #tpu.memory_space<vmem>>, vector<1x1x2x16xf32>,
    %273 = vector.shape_cast %264 : vector<2x1xi1> to vector<2x1xi1>
    %274 = vector.broadcast %273 : vector<2x1xi1> to vector<2x16xi1>
    %275 = arith.select %274, %262, %222 : vector<2x16xi1>, vector<2x16xf32>
    %276 = vector.shape_cast %264 : vector<2x1xi1> to vector<2x1xi1>
    %277 = vector.broadcast %276 : vector<2x1xi1> to vector<2x16xi1>
    %278 = arith.select %277, %260, %225 : vector<2x16xi1>, vector<2x16xf32>
    %c5_i32 = arith.constant 5 : i32
    %c1_i32_75 = arith.constant 1 : i32
    %279 = arith.subi %c1_i32_75, %arg0 : i32
    %280 = arith.muli %c5_i32, %279 : i32
    %c7_i32_76 = arith.constant 7 : i32
    %281 = arith.subi %c7_i32_76, %c5_i32 : i32
    %282 = arith.muli %281, %arg0 : i32
    %283 = arith.addi %280, %282 : i32
    %284 = arith.addi %11, %283 : i32
    %c0_77 = arith.constant 0 : index
    %285 = arith.index_cast %283 : i32 to index
    %c0_78 = arith.constant 0 : index
    %c0_79 = arith.constant 0 : index
    %286 = vector.load %arg3[%c0_77, %285, %c0_78, %c0_79] : memref<1x8x2x64xf32, #tpu.memory_space<vmem>>, vector<1x1x2x64xf32>
    %287 = vector.shape_cast %286 : vector<1x1x2x64xf32> to vector<2x64xf32>
    %288 = arith.truncf %275 : vector<2x16xf32> to vector<2x16xbf16>
    %cst_80 = arith.constant dense<0.000000e+00> : vector<2x64xf32>
    %289 = tpu.matmul %288, %5, %cst_80 {dimension_numbers = #tpu.dot_dimension_numbers<[1], [0], [0], [1], [0, 0, 1, 1], [], []>} : vector<2x16xbf16>, vector<16x64xbf16>, vector<2x64xf32> -> vector<2x64xf32>
    %290 = arith.addf %287, %289 : vector<2x64xf32>
    %291 = vector.extract_strided_slice %290 {offsets = [0, 0], sizes = [2, 16], strides = [1, 1]} : vector<2x64xf32> to vector<2x16xf32>
    %292 = arith.negf %291 : vector<2x16xf32>
    %293 = math.exp %292 : vector<2x16xf32>
    %cst_81 = arith.constant 1.000000e+00 : f32
    %294 = vector.broadcast %cst_81 : f32 to vector<2x16xf32>
    %295 = arith.addf %294, %293 : vector<2x16xf32>
    %296 = arith.divf %294, %295 : vector<2x16xf32>
    %297 = vector.extract_strided_slice %290 {offsets = [0, 16], sizes = [2, 16], strides = [1, 1]} : vector<2x64xf32> to vector<2x16xf32>
    %298 = arith.negf %297 : vector<2x16xf32>
    %299 = math.exp %298 : vector<2x16xf32>
    %cst_82 = arith.constant 1.000000e+00 : f32
    %300 = vector.broadcast %cst_82 : f32 to vector<2x16xf32>
    %301 = arith.addf %300, %299 : vector<2x16xf32>
    %302 = arith.divf %300, %301 : vector<2x16xf32>
    %303 = vector.extract_strided_slice %290 {offsets = [0, 32], sizes = [2, 16], strides = [1, 1]} : vector<2x64xf32> to vector<2x16xf32>
    %304 = math.tanh %303 : vector<2x16xf32>
    %305 = vector.extract_strided_slice %290 {offsets = [0, 48], sizes = [2, 16], strides = [1, 1]} : vector<2x64xf32> to vector<2x16xf32>
    %306 = arith.negf %305 : vector<2x16xf32>
    %307 = math.exp %306 : vector<2x16xf32>
    %cst_83 = arith.constant 1.000000e+00 : f32
    %308 = vector.broadcast %cst_83 : f32 to vector<2x16xf32>
    %309 = arith.addf %308, %307 : vector<2x16xf32>
    %310 = arith.divf %308, %309 : vector<2x16xf32>
    %311 = arith.mulf %302, %278 : vector<2x16xf32>
    %312 = arith.mulf %296, %304 : vector<2x16xf32>
    %313 = arith.addf %311, %312 : vector<2x16xf32>
    %314 = math.tanh %313 : vector<2x16xf32>
    %315 = arith.mulf %310, %314 : vector<2x16xf32>
    %316 = vector.broadcast %284 : i32 to vector<2x1xi32>
    %317 = arith.cmpi sgt, %3, %316 : vector<2x1xi32>
    %cst_84 = arith.constant 0.000000e+00 : f32
    %318 = vector.broadcast %cst_84 : f32 to vector<2x16xf32>
    %319 = vector.shape_cast %317 : vector<2x1xi1> to vector<2x1xi1>
    %320 = vector.broadcast %319 : vector<2x1xi1> to vector<2x16xi1>
    %321 = arith.select %320, %315, %318 : vector<2x16xi1>, vector<2x16xf32>
    %c0_85 = arith.constant 0 : index
    %322 = arith.index_cast %283 : i32 to index
    %c0_86 = arith.constant 0 : index
    %c0_87 = arith.constant 0 : index
    %323 = vector.load %arg5[%c0_85, %322, %c0_86, %c0_87] : memref<1x8x2x16xf32, #tpu.memory_space<vmem>>, vector<1x1x2x16xf32>
    %324 = vector.shape_cast %323 : vector<1x1x2x16xf32> to vector<2x16xf32>
    %325 = vector.shape_cast %321 : vector<2x16xf32> to vector<1x1x2x16xf32>
    tpu.vector_store %arg5[%c0_85, %322, %c0_86, %c0_87], %325 {strides = array<i32>} : memref<1x8x2x16xf32, #tpu.memory_space<vmem>>, vector<1x1x2x16xf32>,
    %326 = vector.shape_cast %317 : vector<2x1xi1> to vector<2x1xi1>
    %327 = vector.broadcast %326 : vector<2x1xi1> to vector<2x16xi1>
    %328 = arith.select %327, %315, %275 : vector<2x16xi1>, vector<2x16xf32>
    %329 = vector.shape_cast %317 : vector<2x1xi1> to vector<2x1xi1>
    %330 = vector.broadcast %329 : vector<2x1xi1> to vector<2x16xi1>
    %331 = arith.select %330, %313, %278 : vector<2x16xi1>, vector<2x16xf32>
    %c6_i32 = arith.constant 6 : i32
    %c1_i32_88 = arith.constant 1 : i32
    %332 = arith.subi %c1_i32_88, %arg0 : i32
    %333 = arith.muli %c6_i32, %332 : i32
    %c7_i32_89 = arith.constant 7 : i32
    %334 = arith.subi %c7_i32_89, %c6_i32 : i32
    %335 = arith.muli %334, %arg0 : i32
    %336 = arith.addi %333, %335 : i32
    %337 = arith.addi %11, %336 : i32
    %c0_90 = arith.constant 0 : index
    %338 = arith.index_cast %336 : i32 to index
    %c0_91 = arith.constant 0 : index
    %c0_92 = arith.constant 0 : index
    %339 = vector.load %arg3[%c0_90, %338, %c0_91, %c0_92] : memref<1x8x2x64xf32, #tpu.memory_space<vmem>>, vector<1x1x2x64xf32>
    %340 = vector.shape_cast %339 : vector<1x1x2x64xf32> to vector<2x64xf32>
    %341 = arith.truncf %328 : vector<2x16xf32> to vector<2x16xbf16>
    %cst_93 = arith.constant dense<0.000000e+00> : vector<2x64xf32>
    %342 = tpu.matmul %341, %5, %cst_93 {dimension_numbers = #tpu.dot_dimension_numbers<[1], [0], [0], [1], [0, 0, 1, 1], [], []>} : vector<2x16xbf16>, vector<16x64xbf16>, vector<2x64xf32> -> vector<2x64xf32>
    %343 = arith.addf %340, %342 : vector<2x64xf32>
    %344 = vector.extract_strided_slice %343 {offsets = [0, 0], sizes = [2, 16], strides = [1, 1]} : vector<2x64xf32> to vector<2x16xf32>
    %345 = arith.negf %344 : vector<2x16xf32>
    %346 = math.exp %345 : vector<2x16xf32>
    %cst_94 = arith.constant 1.000000e+00 : f32
    %347 = vector.broadcast %cst_94 : f32 to vector<2x16xf32>
    %348 = arith.addf %347, %346 : vector<2x16xf32>
    %349 = arith.divf %347, %348 : vector<2x16xf32>
    %350 = vector.extract_strided_slice %343 {offsets = [0, 16], sizes = [2, 16], strides = [1, 1]} : vector<2x64xf32> to vector<2x16xf32>
    %351 = arith.negf %350 : vector<2x16xf32>
    %352 = math.exp %351 : vector<2x16xf32>
    %cst_95 = arith.constant 1.000000e+00 : f32
    %353 = vector.broadcast %cst_95 : f32 to vector<2x16xf32>
    %354 = arith.addf %353, %352 : vector<2x16xf32>
    %355 = arith.divf %353, %354 : vector<2x16xf32>
    %356 = vector.extract_strided_slice %343 {offsets = [0, 32], sizes = [2, 16], strides = [1, 1]} : vector<2x64xf32> to vector<2x16xf32>
    %357 = math.tanh %356 : vector<2x16xf32>
    %358 = vector.extract_strided_slice %343 {offsets = [0, 48], sizes = [2, 16], strides = [1, 1]} : vector<2x64xf32> to vector<2x16xf32>
    %359 = arith.negf %358 : vector<2x16xf32>
    %360 = math.exp %359 : vector<2x16xf32>
    %cst_96 = arith.constant 1.000000e+00 : f32
    %361 = vector.broadcast %cst_96 : f32 to vector<2x16xf32>
    %362 = arith.addf %361, %360 : vector<2x16xf32>
    %363 = arith.divf %361, %362 : vector<2x16xf32>
    %364 = arith.mulf %355, %331 : vector<2x16xf32>
    %365 = arith.mulf %349, %357 : vector<2x16xf32>
    %366 = arith.addf %364, %365 : vector<2x16xf32>
    %367 = math.tanh %366 : vector<2x16xf32>
    %368 = arith.mulf %363, %367 : vector<2x16xf32>
    %369 = vector.broadcast %337 : i32 to vector<2x1xi32>
    %370 = arith.cmpi sgt, %3, %369 : vector<2x1xi32>
    %cst_97 = arith.constant 0.000000e+00 : f32
    %371 = vector.broadcast %cst_97 : f32 to vector<2x16xf32>
    %372 = vector.shape_cast %370 : vector<2x1xi1> to vector<2x1xi1>
    %373 = vector.broadcast %372 : vector<2x1xi1> to vector<2x16xi1>
    %374 = arith.select %373, %368, %371 : vector<2x16xi1>, vector<2x16xf32>
    %c0_98 = arith.constant 0 : index
    %375 = arith.index_cast %336 : i32 to index
    %c0_99 = arith.constant 0 : index
    %c0_100 = arith.constant 0 : index
    %376 = vector.load %arg5[%c0_98, %375, %c0_99, %c0_100] : memref<1x8x2x16xf32, #tpu.memory_space<vmem>>, vector<1x1x2x16xf32>
    %377 = vector.shape_cast %376 : vector<1x1x2x16xf32> to vector<2x16xf32>
    %378 = vector.shape_cast %374 : vector<2x16xf32> to vector<1x1x2x16xf32>
    tpu.vector_store %arg5[%c0_98, %375, %c0_99, %c0_100], %378 {strides = array<i32>} : memref<1x8x2x16xf32, #tpu.memory_space<vmem>>, vector<1x1x2x16xf32>,
    %379 = vector.shape_cast %370 : vector<2x1xi1> to vector<2x1xi1>
    %380 = vector.broadcast %379 : vector<2x1xi1> to vector<2x16xi1>
    %381 = arith.select %380, %368, %328 : vector<2x16xi1>, vector<2x16xf32>
    %382 = vector.shape_cast %370 : vector<2x1xi1> to vector<2x1xi1>
    %383 = vector.broadcast %382 : vector<2x1xi1> to vector<2x16xi1>
    %384 = arith.select %383, %366, %331 : vector<2x16xi1>, vector<2x16xf32>
    %c7_i32_101 = arith.constant 7 : i32
    %c1_i32_102 = arith.constant 1 : i32
    %385 = arith.subi %c1_i32_102, %arg0 : i32
    %386 = arith.muli %c7_i32_101, %385 : i32
    %c7_i32_103 = arith.constant 7 : i32
    %387 = arith.subi %c7_i32_103, %c7_i32_101 : i32
    %388 = arith.muli %387, %arg0 : i32
    %389 = arith.addi %386, %388 : i32
    %390 = arith.addi %11, %389 : i32
    %c0_104 = arith.constant 0 : index
    %391 = arith.index_cast %389 : i32 to index
    %c0_105 = arith.constant 0 : index
    %c0_106 = arith.constant 0 : index
    %392 = vector.load %arg3[%c0_104, %391, %c0_105, %c0_106] : memref<1x8x2x64xf32, #tpu.memory_space<vmem>>, vector<1x1x2x64xf32>
    %393 = vector.shape_cast %392 : vector<1x1x2x64xf32> to vector<2x64xf32>
    %394 = arith.truncf %381 : vector<2x16xf32> to vector<2x16xbf16>
    %cst_107 = arith.constant dense<0.000000e+00> : vector<2x64xf32>
    %395 = tpu.matmul %394, %5, %cst_107 {dimension_numbers = #tpu.dot_dimension_numbers<[1], [0], [0], [1], [0, 0, 1, 1], [], []>} : vector<2x16xbf16>, vector<16x64xbf16>, vector<2x64xf32> -> vector<2x64xf32>
    %396 = arith.addf %393, %395 : vector<2x64xf32>
    %397 = vector.extract_strided_slice %396 {offsets = [0, 0], sizes = [2, 16], strides = [1, 1]} : vector<2x64xf32> to vector<2x16xf32>
    %398 = arith.negf %397 : vector<2x16xf32>
    %399 = math.exp %398 : vector<2x16xf32>
    %cst_108 = arith.constant 1.000000e+00 : f32
    %400 = vector.broadcast %cst_108 : f32 to vector<2x16xf32>
    %401 = arith.addf %400, %399 : vector<2x16xf32>
    %402 = arith.divf %400, %401 : vector<2x16xf32>
    %403 = vector.extract_strided_slice %396 {offsets = [0, 16], sizes = [2, 16], strides = [1, 1]} : vector<2x64xf32> to vector<2x16xf32>
    %404 = arith.negf %403 : vector<2x16xf32>
    %405 = math.exp %404 : vector<2x16xf32>
    %cst_109 = arith.constant 1.000000e+00 : f32
    %406 = vector.broadcast %cst_109 : f32 to vector<2x16xf32>
    %407 = arith.addf %406, %405 : vector<2x16xf32>
    %408 = arith.divf %406, %407 : vector<2x16xf32>
    %409 = vector.extract_strided_slice %396 {offsets = [0, 32], sizes = [2, 16], strides = [1, 1]} : vector<2x64xf32> to vector<2x16xf32>
    %410 = math.tanh %409 : vector<2x16xf32>
    %411 = vector.extract_strided_slice %396 {offsets = [0, 48], sizes = [2, 16], strides = [1, 1]} : vector<2x64xf32> to vector<2x16xf32>
    %412 = arith.negf %411 : vector<2x16xf32>
    %413 = math.exp %412 : vector<2x16xf32>
    %cst_110 = arith.constant 1.000000e+00 : f32
    %414 = vector.broadcast %cst_110 : f32 to vector<2x16xf32>
    %415 = arith.addf %414, %413 : vector<2x16xf32>
    %416 = arith.divf %414, %415 : vector<2x16xf32>
    %417 = arith.mulf %408, %384 : vector<2x16xf32>
    %418 = arith.mulf %402, %410 : vector<2x16xf32>
    %419 = arith.addf %417, %418 : vector<2x16xf32>
    %420 = math.tanh %419 : vector<2x16xf32>
    %421 = arith.mulf %416, %420 : vector<2x16xf32>
    %422 = vector.broadcast %390 : i32 to vector<2x1xi32>
    %423 = arith.cmpi sgt, %3, %422 : vector<2x1xi32>
    %cst_111 = arith.constant 0.000000e+00 : f32
    %424 = vector.broadcast %cst_111 : f32 to vector<2x16xf32>
    %425 = vector.shape_cast %423 : vector<2x1xi1> to vector<2x1xi1>
    %426 = vector.broadcast %425 : vector<2x1xi1> to vector<2x16xi1>
    %427 = arith.select %426, %421, %424 : vector<2x16xi1>, vector<2x16xf32>
    %c0_112 = arith.constant 0 : index
    %428 = arith.index_cast %389 : i32 to index
    %c0_113 = arith.constant 0 : index
    %c0_114 = arith.constant 0 : index
    %429 = vector.load %arg5[%c0_112, %428, %c0_113, %c0_114] : memref<1x8x2x16xf32, #tpu.memory_space<vmem>>, vector<1x1x2x16xf32>
    %430 = vector.shape_cast %429 : vector<1x1x2x16xf32> to vector<2x16xf32>
    %431 = vector.shape_cast %427 : vector<2x16xf32> to vector<1x1x2x16xf32>
    tpu.vector_store %arg5[%c0_112, %428, %c0_113, %c0_114], %431 {strides = array<i32>} : memref<1x8x2x16xf32, #tpu.memory_space<vmem>>, vector<1x1x2x16xf32>,
    %432 = vector.shape_cast %423 : vector<2x1xi1> to vector<2x1xi1>
    %433 = vector.broadcast %432 : vector<2x1xi1> to vector<2x16xi1>
    %434 = arith.select %433, %421, %381 : vector<2x16xi1>, vector<2x16xf32>
    %435 = vector.shape_cast %423 : vector<2x1xi1> to vector<2x1xi1>
    %436 = vector.broadcast %435 : vector<2x1xi1> to vector<2x16xi1>
    %437 = arith.select %436, %419, %384 : vector<2x16xi1>, vector<2x16xf32>
    %c8_i32_115 = arith.constant 8 : i32
    %c0_116 = arith.constant 0 : index
    %c0_117 = arith.constant 0 : index
    %438 = vector.load %arg6[%c0_116, %c0_117] : memref<2x16xf32, #tpu.memory_space<vmem>>, vector<2x16xf32>
    tpu.vector_store %arg6[%c0_116, %c0_117], %434 {strides = array<i32>} : memref<2x16xf32, #tpu.memory_space<vmem>>, vector<2x16xf32>,
    %c0_118 = arith.constant 0 : index
    %c0_119 = arith.constant 0 : index
    %439 = vector.load %arg7[%c0_118, %c0_119] : memref<2x16xf32, #tpu.memory_space<vmem>>, vector<2x16xf32>
    tpu.vector_store %arg7[%c0_118, %c0_119], %437 {strides = array<i32>} : memref<2x16xf32, #tpu.memory_space<vmem>>, vector<2x16xf32>,
    return
  }
  func.func @transform_0(%arg0: i32, %arg1: i32) -> (i32, i32) {
    %c0_i32 = arith.constant 0 : i32
    %c0_i32_0 = arith.constant 0 : i32
    %c0_i32_1 = arith.constant 0 : i32
    return %c0_i32, %c0_i32_0 : i32, i32
  }
  func.func @transform_1(%arg0: i32, %arg1: i32) -> (i32, i32, i32, i32) {
    %c1_i32 = arith.constant 1 : i32
    %0 = arith.subi %c1_i32, %arg0 : i32
    %1 = arith.muli %arg1, %0 : i32
    %c0_i32 = arith.constant 0 : i32
    %2 = arith.subi %c0_i32, %arg1 : i32
    %3 = arith.muli %2, %arg0 : i32
    %4 = arith.addi %1, %3 : i32
    %c0_i32_0 = arith.constant 0 : i32
    %c0_i32_1 = arith.constant 0 : i32
    %c0_i32_2 = arith.constant 0 : i32
    return %arg0, %4, %c0_i32_0, %c0_i32_1 : i32, i32, i32, i32
  }
  func.func @transform_2(%arg0: i32, %arg1: i32) -> (i32, i32, i32) {
    %c0_i32 = arith.constant 0 : i32
    %c0_i32_0 = arith.constant 0 : i32
    %c0_i32_1 = arith.constant 0 : i32
    return %arg0, %c0_i32, %c0_i32_0 : i32, i32, i32
  }
  func.func @transform_3(%arg0: i32, %arg1: i32) -> (i32, i32, i32, i32) {
    %c1_i32 = arith.constant 1 : i32
    %0 = arith.subi %c1_i32, %arg0 : i32
    %1 = arith.muli %arg1, %0 : i32
    %c0_i32 = arith.constant 0 : i32
    %2 = arith.subi %c0_i32, %arg1 : i32
    %3 = arith.muli %2, %arg0 : i32
    %4 = arith.addi %1, %3 : i32
    %c0_i32_0 = arith.constant 0 : i32
    %c0_i32_1 = arith.constant 0 : i32
    %c0_i32_2 = arith.constant 0 : i32
    return %arg0, %4, %c0_i32_0, %c0_i32_1 : i32, i32, i32, i32
  }
}

</mosaic_0001>

<bundles_post_ra>
// kernel: bilstm_crf_forward.3
= control target key start
LH: loop header
LB: loop body
LE: loop exit
PB: predicated region body
PF: predicated region fallthrough
CT: control target
= control target key end

     0   :  { %vm31_vm0 = vcmask 130048   ;;  %s320_s13 = smov 24   ;;  %s321_s14 = smov 32   ;;  %vm247_vm1 = vcmask 64512   ;;  %vm252_vm2 = vcmask 195584   ;;  %vm255_vm3 = vcmask 261120   ;;  %s402_s3 = inlined_call_operand.vmem [shape: f32[16,8], index: 3, kind: input, shape index: {}]   ;;  %s403_s2 = inlined_call_operand.vmem [shape: f32[16,8], index: 2, kind: input, shape index: {}]   ;;  %s404_s1 = inlined_call_operand.vmem [shape: f32[16,16], index: 1, kind: input, shape index: {}]   ;;  %s405_s0 = inlined_call_operand.vmem [shape: f32[16,16], index: 0, kind: input, shape index: {}]   ;;  %s406_s4 = inlined_call_operand.vmem [shape: f32[1,8], index: 4, kind: input, shape index: {}]   ;;  %s407_s5 = inlined_call_operand.vmem [shape: f32[1,64], index: 5, kind: input, shape index: {}]   ;;  %s408_s6 = inlined_call_operand.vmem [shape: f32[16,64], index: 6, kind: output, shape index: {}]  }
   0x1   :  { %v30_v0 = vld [vmem:[%s402_s3 + $0x8] sm:$0xff]  ;;  %v29_v2 = vld [vmem:[%s402_s3] sm:$0xff]  ;;  %s322_s15 = smov 40   ;;  %s324_s16 = smov 56   ;;  %vm258_vm4 = vcmask 326656   ;;  %vm261_vm5 = vcmask 392192  }
   0x2   :  { %v26_v1 = vld [vmem:[%s403_s2 + $0x8] sm:$0xff]  ;;  %297 = vmatprep.subr.mxu0 %v30_v0  ;;  %v25_v3 = vld [vmem:[%s403_s2] sm:$0xff]  ;;  %vm264_vm6 = vcmask 457728   ;;  %vm276_vm7 = vcmask 523264  }
   0x3   :  { %304 = vmatprep.subr.mxu1 %v26_v1  ;;  %v27_v4 = vld [vmem:[%s404_s1] sm:$0xff]  ;;  %298 = vmatpush3.msra.mxu0 %v30_v0  ;;  %v28_v6 = vld [vmem:[%s404_s1 + $0x8] sm:$0xff]  ;;  %s319_s1 = smov 8  }
   0x4   :  { %305 = vmatpush3.msra.mxu1 %v26_v1  ;;  %v23_v5 = vld [vmem:[%s405_s0] sm:$0xff]  ;;  %299 = vmatprep.subr.mxu0 %v29_v2  ;;  %v24_v7 = vld [vmem:[%s405_s0 + $0x8] sm:$0xff]  ;;  %s318_s0 = smov 16  }
   0x5   :  { %306 = vmatprep.subr.mxu1 %v25_v3  ;;  %300 = vmatpush3.msra.mxu0 %v29_v2  ;;  %v287_v10 = vld [vmem:[%s406_s4] ss:$0 sm:$0xff]  ;;  %s323_s4 = smov 48  }
   0x6   :  { %301 = vmatprep.mubr.msk.f32.mxu0 %vm31_vm0, %v27_v4  ;;  %307 = vmatpush3.msra.mxu1 %v25_v3  ;;  %v288_v39 = vld [vmem:[%s407_s5] ss:$0 sm:$0xff] }
   0x7   :  { %308 = vmatprep.mubr.msk.f32.mxu1 %vm31_vm0, %v23_v5  ;;  %302 = vmatmul.mubr.msk.f32.vlgmr.msra.gmra.mxu0 %vm31_vm0, %v28_v6 }
   0x8   :  { %309 = vmatmul.mubr.msk.f32.vlgmr.msra.gmra.mxu1 %vm31_vm0, %v24_v7 }
  0xc7   :  { %v303_v8 = vpop.f32.mrf.mxu0 }
  0xc8   :  { %v310_v9 = vpop.f32.mrf.mxu1 }
  0xc9   :  { %v191_v11 = vadd.f32 %v310_v9, %v303_v8  ;;  %v104_v12 = vpop.f32.mrf.mxu0 }
  0xca   :  { %v185_v13 = vpop.f32.mrf.mxu1 }
  0xcb   :  { %v202_v14 = vadd.f32 %v287_v10, %v191_v11  ;;  %v186_v15 = vadd.f32 %v185_v13, %v104_v12 }
  0xcd   :  { %213 = vrot.lane.b32.xlu1 %v202_v14, %s318_s0  ;;  %207 = vrot.lane.b32.xlu0 %v202_v14, %s319_s1  ;;  %v201_v16 = vadd.f32 %v287_v10, %v186_v15 }
  0xd1   :  { %219 = vrot.lane.b32.xlu1 %v202_v14, %s320_s13  ;;  %205 = vrot.lane.b32.xlu0 %v201_v16, %s319_s1 }
  0xd5   :  { %225 = vrot.lane.b32.xlu1 %v202_v14, %s321_s14  ;;  %217 = vrot.lane.b32.xlu0 %v201_v16, %s320_s13 }
  0xd9   :  { %231 = vrot.lane.b32.xlu1 %v202_v14, %s322_s15  ;;  %223 = vrot.lane.b32.xlu0 %v201_v16, %s321_s14 }
  0xdd   :  { %211 = vrot.lane.b32.xlu1 %v201_v16, %s318_s0  ;;  %229 = vrot.lane.b32.xlu0 %v201_v16, %s322_s15 }
  0xe1   :  { %237 = vrot.lane.b32.xlu1 %v202_v14, %s323_s4  ;;  %235 = vrot.lane.b32.xlu0 %v201_v16, %s323_s4 }
  0xe5   :  { %243 = vrot.lane.b32.xlu1 %v202_v14, %s324_s16  ;;  %241 = vrot.lane.b32.xlu0 %v201_v16, %s324_s16 }
 0x13f   :  { %v214_v17 = vpop.permute.xlu1 %213  ;;  %v208_v18 = vpop.permute.xlu0 %207 }
 0x140   :  { %v249_v28 = vsel %vm247_vm1, %v202_v14, %v208_v18 }
 0x141   :  { %v251_v32 = vsel %vm31_vm0, %v249_v28, %v214_v17 }
 0x143   :  { %v220_v19 = vpop.permute.xlu1 %219  ;;  %v206_v20 = vpop.permute.xlu0 %205 }
 0x144   :  { %v248_v25 = vsel %vm247_vm1, %v201_v16, %v206_v20  ;;  %v254_v35 = vsel %vm252_vm2, %v251_v32, %v220_v19 }
 0x147   :  { %v226_v21 = vpop.permute.xlu1 %225  ;;  %v218_v22 = vpop.permute.xlu0 %217 }
 0x148   :  { %v257_v37 = vsel %vm255_vm3, %v254_v35, %v226_v21 }
 0x14b   :  { %v232_v23 = vpop.permute.xlu1 %231  ;;  %v224_v24 = vpop.permute.xlu0 %223 }
 0x14c   :  { %v260_v38 = vsel %vm258_vm4, %v257_v37, %v232_v23 }
 0x14f   :  { %v212_v26 = vpop.permute.xlu1 %211  ;;  %v230_v27 = vpop.permute.xlu0 %229 }
 0x150   :  { %v250_v29 = vsel %vm31_vm0, %v248_v25, %v212_v26 }
 0x151   :  { %v253_v30 = vsel %vm252_vm2, %v250_v29, %v218_v22 }
 0x152   :  { %v256_v31 = vsel %vm255_vm3, %v253_v30, %v224_v24 }
 0x153   :  { %v238_v33 = vpop.permute.xlu1 %237  ;;  %v236_v34 = vpop.permute.xlu0 %235  ;;  %v259_v36 = vsel %vm258_vm4, %v256_v31, %v230_v27 }
 0x154   :  { %v263_v40 = vsel %vm261_vm5, %v260_v38, %v238_v33  ;;  %v262_v41 = vsel %vm261_vm5, %v259_v36, %v236_v34 }
 0x157   :  { %v244_v42 = vpop.permute.xlu1 %243  ;;  %v242_v43 = vpop.permute.xlu0 %241 }
 0x158   :  { %v266_v44 = vsel %vm264_vm6, %v263_v40, %v244_v42  ;;  %v265_v45 = vsel %vm264_vm6, %v262_v41, %v242_v43 }
 0x159   :  { %v275_v46 = vadd.f32 %v288_v39, %v266_v44  ;;  %v274_v47 = vadd.f32 %v288_v39, %v265_v45 }
 0x15b   :  { %278 = vst.msk [vmem:[%s408_s6 + $0x8] sm:$0xff] %vm276_vm7, %v275_v46  ;;  %277 = vst.msk [vmem:[%s408_s6] sm:$0xff] %vm276_vm7, %v274_v47 }

// kernel: bilstm_crf_forward.2
= control target key start
LH: loop header
LB: loop body
LE: loop exit
PB: predicated region body
PF: predicated region fallthrough
CT: control target
= control target key end

     0   :  { %s1526_s12 = smov 0   ;;  %s1528_s13 = smov 0   ;;  %s1878_s0 = inlined_call_operand.vmem [shape: s32[2,1], index: 0, kind: input, shape index: {}]   ;;  %s1879_s1 = inlined_call_operand.vmem [shape: f32[2,8,2,64], index: 1, kind: input, shape index: {}]   ;;  %s1880_s2 = inlined_call_operand.vmem [shape: bf16[2,16,64], index: 2, kind: input, shape index: {}]   ;;  %s1881_s3 = inlined_call_operand.vmem [shape: f32[2,8,2,16], index: 3, kind: output, shape index: {}]  }
   0x1   :  { %s1530_s14 = smov 0  }
   0x2 LB: > { %s25_s15 = sadd.s32 1, %s1491_s13  ;;  %p1268_p0 = scmp.ge.s32.totalorder %s1495_s14, 1  ;;  %s1495_s14 = sphi %s1530_s14, %s13_s14   ;;  %s1491_s13 = sphi %s1528_s13, %s1885_s13   ;;  %s1487_s12 = sphi %s1526_s12, %s1884_s12  }
   0x3   : > { %p27_p1 = scmp.ge.s32.totalorder %s25_s15, 2  ;;  %p198_p2 = scmp.lt.s32.totalorder %s1495_s14, 3 }
   0x5   : > { %s1887_s15 = smov (%p27_p1, %s25_s15), 0  ;;  %p199_p3 = pnand %p1268_p0, %p198_p2 }
   0x6   : > { %p251_p4 = scmp.lt.s32.totalorder (!%p199_p3), %s1487_s12, 1  ;;  %s1275_s22 = smul.u32 (!%p199_p3), 14, %s1487_s12 }
   0x7   : > { %202 = sbr.rel (%p199_p3) target bundleno = 5562 (0x15ba), region = 32  ;;  %s1500_s27 = smov (!%p199_p3), 96  }
   0x8   : > { %s1501_s28 = smov (!%p199_p3), 16   ;;  %s309_s29 = smul.u32 (!%p199_p3), 7, %s1487_s12 }
   0x9   : > { %s1502_s5 = smov (!%p199_p3), 48   ;;  %s1503_s6 = smov (!%p199_p3), 32  }
   0xa   : > { %s1504_s7 = smov (!%p199_p3), 80   ;;  %s415_s8 = smul.u32 (!%p199_p3), 6, %s1487_s12 }
   0xb   : > { %s1617_s9 = ssub.s32 (!%p199_p3), 1, %s1487_s12  ;;  %s510_s18 = smul.u32 (!%p199_p3), 5, %s1487_s12 }
   0xc   : > { %vm295_vm0 = vcmask 123904   ;;  %v1497_v0 = vmov 0.0   ;;  %vm1498_vm1 = vmmov 0   ;;  %s1555_s16 = scalar_select %p251_p4, %s1487_s12, 1  ;;  %vm321_vm2 = vcmask 130048  }
   0xd   : > { %1325 = vmatprep.subr.bf16.mxu0 %v1497_v0  ;;  %1327 = vmatprep.mubr.msk.bf16.mxu0 %vm1498_vm1, %v1497_v0  ;;  %296 = vst.msk [vmem:[#allocation2] sm:$0x3] %vm295_vm0, %v1497_v0  ;;  %297 = vst.msk [vmem:[#allocation3] sm:$0x3] %vm295_vm0, %v1497_v0  ;;  %v1499_v10 = vmov 0   ;;  %v394_v17 = vstv %s309_s29  ;;  %s1620_s10 = sadd.s32 %s415_s8, %s1617_s9  ;;  %s1282_s19 = sshll.u32 %s1617_s9, 1 }
   0xe   : > { %1331 = vmatprep.subr.bf16.mxu1 %v1497_v0  ;;  %1333 = vmatprep.mubr.msk.bf16.mxu1 %vm1498_vm1, %v1497_v0  ;;  %s1307_s17 = sshll.u32 %s1555_s16, 3  ;;  %s1306_s21 = sshll.u32 %s1555_s16, 4  ;;  %v1595_v16 = vld [vmem:[%s1878_s0] sm:$0x3]  ;;  %v493_v40 = vstv %s1620_s10 }
   0xf   : > { %s269_s20 = scalar_lea.vmem %s1880_s2, %s1307_s17  ;;  %s1582_s25 = scalar_lea.vmem %s1879_s1, %s1306_s21  ;;  %1406 = vset.pattern.permute.xlu1 %v1499_v10  ;;  %1407 = vset.pattern.permute.xlu0 %v1499_v10  ;;  %vm395_vm3 = vcmp.gt.s32.totalorder %v1595_v16, %v394_v17  ;;  %vm494_vm5 = vcmp.gt.s32.totalorder %v1595_v16, %v493_v40 }
  0x10   : > { %v1564_v1 = vld [vmem:[%s269_s20] sm:$0xff]   ;;  %s312_s26 = scalar_lea.vmem %s1582_s25, %s1275_s22  ;;  %v396_v21 = vsel %vm395_vm3, 1, %v1499_v10  ;;  %s1279_s11 = sshll.u32 %s1620_s10, 1  ;;  %v495_v42 = vsel %vm494_vm5, 1, %v1499_v10 }
  0x11   : > { %1326 = vmatpush3.bf16.msra.mxu0 %v1564_v1  ;;  %1332 = vmatpush3.bf16.msra.mxu1 %v1564_v1  ;;  %v313_v4 = vld [vmem:[%s312_s26] sm:$0x3]  ;;  %s419_s17 = scalar_lea.vmem %s1582_s25, %s1279_s11  ;;  %s1650_s20 = sadd.s32 %s1282_s19, %s510_s18 }
  0x12   : > { %1337 = vmatprep.subr.bf16.mxu0 %v1497_v0  ;;  %1343 = vmatprep.subr.bf16.mxu1 %v1497_v0  ;;  %v420_v34 = vld [vmem:[%s419_s17] sm:$0x3]  ;;  %s1283_s23 = sshll.u32 %s1650_s20, 1  ;;  %s604_s26 = smul.u32 3, %s1617_s9 }
  0x13   : > { %s514_s24 = scalar_lea.vmem %s1582_s25, %s1283_s23  ;;  %s1286_s29 = sshll.u32 %s1487_s12, 2 }
  0x14   : > { %v307_v2 = vld [vmem:[#allocation2] sm:$0x3]  ;;  %v308_v12 = vld [vmem:[#allocation3] sm:$0x3]  ;;  %s1680_s30 = sadd.s32 %s1286_s29, %s604_s26  ;;  %s700_s8 = smul.u32 3, %s1487_s12 }
  0x15   : > { %v314_v3 = vpack.c.bf16 %v307_v2, %v307_v2  ;;  %v515_v60 = vld [vmem:[%s514_s24] sm:$0x3]  ;;  %s1287_s4 = sshll.u32 %s1680_s30, 1  ;;  %s1290_s17 = sshll.u32 %s1617_s9, 2 }
  0x16   : > { %s1709_s18 = sadd.s32 %s1290_s17, %s700_s8  ;;  %s794_s26 = smul.u32 5, %s1617_s9 }
  0x17   : > { %1328 = vmatmul.mubr.msk.bf16.vlgmr.msra.gmra.mxu0 %vm321_vm2, %v314_v3  ;;  %s1291_s19 = sshll.u32 %s1709_s18, 1  ;;  %s1294_s29 = sshll.u32 %s1487_s12, 1 }
  0x18   : > { %1338 = vmatpush3.bf16.msra.mxu0 %v1564_v1  ;;  %1339 = vmatprep.mubr.msk.bf16.mxu0 %vm1498_vm1, %v1497_v0  ;;  %s704_s24 = scalar_lea.vmem %s1582_s25, %s1291_s19 }
  0x19   : > { %1349 = vmatprep.subr.bf16.mxu0 %v1497_v0 }
  0xd7   : > { %v359_v5 = vpop.f32.mrf.mxu0 }
  0xd8   : > { %v365_v6 = vadd.f32 %v359_v5, %v313_v4  ;;  %v588_v4 = vstv %s1650_s20 }
  0xd9   : > { %v1329_v7 = vpop.f32.mrf.mxu0  ;;  %vm589_vm7 = vcmp.gt.s32.totalorder %v1595_v16, %v588_v4 }
  0xda   : > { %1409 = vtanh.f32 %v365_v6  ;;  %v1278_v13 = vmul.f32 -1.442695, %v365_v6  ;;  %v590_v6 = vsel %vm589_vm7, 1, %v1499_v10 }
  0xdb   : > { %v362_v8 = vpop.f32.mrf.mxu0 }
  0xdc   : > { %1411 = vpow2.f32 %v1278_v13 }
  0xdd   : > { %v1330_v9 = vpop.f32.mrf.mxu0 }
  0xe7   : > { %v1410_v11 = vpop.eup %1409 }
  0xe8   : > { %379 = vrot.lane.b32.xlu0 %v1410_v11, %s1500_s27 }
  0xe9   : > { %v1412_v14 = vpop.eup %1411 }
  0xea   : > { %v369_v15 = vadd.f32 1.0, %v1412_v14 }
  0xec   : > { %374 = vrot.lane.b32.xlu0 %v308_v12, %s1501_s28  ;;  %1413 = vrcp.f32 %v369_v15 }
  0xf9   : > { %v1414_v18 = vpop.eup %1413 }
 0x15a   : > { %v380_v19 = vpop.permute.xlu0 %379 }
 0x15b   : > { %v382_v20 = vmul.f32 %v1414_v18, %v380_v19 }
 0x15d   : > { %384 = vrot.lane.b32.xlu1 %v382_v20, %s1501_s28 }
 0x15e   : > { %v375_v22 = vpop.permute.xlu0 %374 }
 0x15f   : > { %v377_v23 = vmul.f32 %v1414_v18, %v375_v22 }
 0x161   : > { %398 = vperm.xlu1 %1406, %v396_v21  }
 0x165   : > { %410 = vrot.lane.b32.xlu1 %v307_v2, %s1502_s5  ;;  %s609_s5 = scalar_lea.vmem %s1582_s25, %s1287_s4 }
 0x1cf   : > { %v385_v24 = vpop.permute.xlu1 %384 }
 0x1d0   : > { %v387_v25 = vadd.f32 %v385_v24, %v377_v23 }
 0x1d2   : > { %1415 = vtanh.f32 %v387_v25 }
 0x1dc   : > { %v1601_v27 = vpop.permute.xlu1 %398 }
 0x1dd   : > { %vm400_vm4 = vcmp.eq.s32.totalorder %v1601_v27, 1 }
 0x1de   : > { %v414_v49 = vsel %vm400_vm4, %v387_v25, %v375_v22 }
 0x1df   : > { %v1416_v26 = vpop.eup %1415 }
 0x1e0   : > { %390 = vrot.lane.b32.xlu0 %v1416_v26, %s1503_s6  ;;  %v411_v29 = vpop.permute.xlu1 %410  ;;  %v610_v26 = vld [vmem:[%s609_s5] sm:$0x3]  ;;  %s1738_s5 = sadd.s32 %s1294_s29, %s794_s26 }
 0x1e1   : > { %s1295_s8 = sshll.u32 %s1738_s5, 1 }
 0x1e2   : > { %s799_s17 = scalar_lea.vmem %s1582_s25, %s1295_s8 }
 0x252   : > { %v391_v28 = vpop.permute.xlu0 %390 }
 0x253   : > { %v1603_v30 = vmul.f32 %v1414_v18, %v391_v28 }
 0x255   : > { %v413_v31 = vsel %vm400_vm4, %v1603_v30, %v411_v29 }
 0x256   : > { %v421_v32 = vpack.c.bf16 %v413_v31, %v413_v31 }
 0x258   : > { %423 = vrot.lane.b32.xlu0 %v421_v32, %s1504_s7 }
 0x2ca   : > { %v424_v33 = vpop.permute.xlu0 %423 }
 0x2cb   : > { %1334 = vmatmul.mubr.msk.bf16.vlgmr.msra.gmra.mxu1 %vm321_vm2, %v424_v33 }
 0x2cc   : > { %1344 = vmatpush3.bf16.msra.mxu1 %v1564_v1  ;;  %1345 = vmatprep.mubr.msk.bf16.mxu1 %vm1498_vm1, %v1497_v0 }
 0x2cd   : > { %1355 = vmatprep.subr.bf16.mxu1 %v1497_v0 }
 0x38b   : > { %v462_v35 = vpop.f32.mrf.mxu1 }
 0x38c   : > { %v468_v36 = vadd.f32 %v462_v35, %v420_v34  ;;  %v683_v34 = vstv %s1680_s30 }
 0x38d   : > { %v1335_v37 = vpop.f32.mrf.mxu1  ;;  %vm684_vm9 = vcmp.gt.s32.totalorder %v1595_v16, %v683_v34 }
 0x38e   : > { %1417 = vtanh.f32 %v468_v36  ;;  %v1281_v43 = vmul.f32 -1.442695, %v468_v36  ;;  %v685_v36 = vsel %vm684_vm9, 1, %v1499_v10 }
 0x38f   : > { %v465_v38 = vpop.f32.mrf.mxu1 }
 0x390   : > { %1419 = vpow2.f32 %v1281_v43 }
 0x391   : > { %v1336_v39 = vpop.f32.mrf.mxu1 }
 0x39b   : > { %v1418_v41 = vpop.eup %1417 }
 0x39c   : > { %478 = vrot.lane.b32.xlu1 %v1418_v41, %s1500_s27 }
 0x39d   : > { %v1420_v44 = vpop.eup %1419 }
 0x39e   : > { %v472_v45 = vadd.f32 1.0, %v1420_v44 }
 0x3a0   : > { %497 = vperm.xlu1 %1406, %v495_v42   ;;  %1421 = vrcp.f32 %v472_v45 }
 0x3ad   : > { %v1422_v46 = vpop.eup %1421 }
 0x3ae   : > { %v476_v50 = vmul.f32 %v1422_v46, %v414_v49 }
 0x40e   : > { %v479_v47 = vpop.permute.xlu1 %478 }
 0x40f   : > { %v481_v48 = vmul.f32 %v1422_v46, %v479_v47 }
 0x411   : > { %483 = vrot.lane.b32.xlu0 %v481_v48, %s1501_s28 }
 0x41b   : > { %v1634_v54 = vpop.permute.xlu1 %497 }
 0x41c   : > { %vm499_vm6 = vcmp.eq.s32.totalorder %v1634_v54, 1 }
 0x483   : > { %v484_v51 = vpop.permute.xlu0 %483 }
 0x484   : > { %v486_v52 = vadd.f32 %v484_v51, %v476_v50 }
 0x486   : > { %1423 = vtanh.f32 %v486_v52  ;;  %v508_v14 = vsel %vm499_vm6, %v486_v52, %v414_v49 }
 0x493   : > { %v1424_v53 = vpop.eup %1423 }
 0x494   : > { %489 = vrot.lane.b32.xlu0 %v1424_v53, %s1503_s6 }
 0x506   : > { %v490_v55 = vpop.permute.xlu0 %489 }
 0x507   : > { %v1636_v56 = vmul.f32 %v1422_v46, %v490_v55  ;;  %v705_v55 = vld [vmem:[%s704_s24] sm:$0x3]  ;;  %s889_s24 = smul.u32 6, %s1617_s9 }
 0x509   : > { %v507_v57 = vsel %vm499_vm6, %v1636_v56, %v413_v31  ;;  %s1764_s26 = sadd.s32 %s1487_s12, %s889_s24  ;;  %s1301_s24 = smul.u32 14, %s1617_s9 }
 0x50a   : > { %v516_v58 = vpack.c.bf16 %v507_v57, %v507_v57  ;;  %s1882_s29 = sshll.u32 %s1764_s26, 1 }
 0x50c   : > { %518 = vrot.lane.b32.xlu1 %v516_v58, %s1504_s7 }
 0x57e   : > { %v519_v59 = vpop.permute.xlu1 %518 }
 0x57f   : > { %1340 = vmatmul.mubr.msk.bf16.vlgmr.msra.gmra.mxu0 %vm321_vm2, %v519_v59 }
 0x580   : > { %1350 = vmatpush3.bf16.msra.mxu0 %v1564_v1  ;;  %1351 = vmatprep.mubr.msk.bf16.mxu0 %vm1498_vm1, %v1497_v0 }
 0x581   : > { %1361 = vmatprep.subr.bf16.mxu0 %v1497_v0 }
 0x63f   : > { %v557_v61 = vpop.f32.mrf.mxu0 }
 0x640   : > { %v563_v62 = vadd.f32 %v557_v61, %v515_v60 }
 0x641   : > { %v1341_v63 = vpop.f32.mrf.mxu0 }
 0x642   : > { %1425 = vtanh.f32 %v563_v62  ;;  %v1285_v7 = vmul.f32 -1.442695, %v563_v62  ;;  %v778_v62 = vstv %s1709_s18 }
 0x643   : > { %v560_v2 = vpop.f32.mrf.mxu0  ;;  %vm779_vm11 = vcmp.gt.s32.totalorder %v1595_v16, %v778_v62 }
 0x644   : > { %1427 = vpow2.f32 %v1285_v7  ;;  %v780_v2 = vsel %vm779_vm11, 1, %v1499_v10 }
 0x645   : > { %v1342_v3 = vpop.f32.mrf.mxu0 }
 0x64f   : > { %v1426_v5 = vpop.eup %1425 }
 0x650   : > { %573 = vrot.lane.b32.xlu0 %v1426_v5, %s1500_s27 }
 0x651   : > { %v1428_v8 = vpop.eup %1427 }
 0x652   : > { %v567_v9 = vadd.f32 1.0, %v1428_v8 }
 0x654   : > { %592 = vperm.xlu0 %1407, %v590_v6   ;;  %1429 = vrcp.f32 %v567_v9 }
 0x661   : > { %v1430_v11 = vpop.eup %1429 }
 0x662   : > { %v571_v15 = vmul.f32 %v1430_v11, %v508_v14 }
 0x6c2   : > { %v574_v12 = vpop.permute.xlu0 %573 }
 0x6c3   : > { %v576_v13 = vmul.f32 %v1430_v11, %v574_v12 }
 0x6c5   : > { %578 = vrot.lane.b32.xlu1 %v576_v13, %s1501_s28 }
 0x6cf   : > { %v1664_v20 = vpop.permute.xlu0 %592 }
 0x6d0   : > { %vm594_vm8 = vcmp.eq.s32.totalorder %v1664_v20, 1 }
 0x737   : > { %v579_v17 = vpop.permute.xlu1 %578 }
 0x738   : > { %v581_v18 = vadd.f32 %v579_v17, %v571_v15 }
 0x73a   : > { %1431 = vtanh.f32 %v581_v18  ;;  %v603_v43 = vsel %vm594_vm8, %v581_v18, %v508_v14 }
 0x747   : > { %v1432_v19 = vpop.eup %1431 }
 0x748   : > { %584 = vrot.lane.b32.xlu1 %v1432_v19, %s1503_s6 }
 0x7ba   : > { %v585_v21 = vpop.permute.xlu1 %584 }
 0x7bb   : > { %v1666_v22 = vmul.f32 %v1430_v11, %v585_v21 }
 0x7bd   : > { %v602_v23 = vsel %vm594_vm8, %v1666_v22, %v507_v57 }
 0x7be   : > { %v611_v24 = vpack.c.bf16 %v602_v23, %v602_v23 }
 0x7c0   : > { %613 = vrot.lane.b32.xlu1 %v611_v24, %s1504_s7  ;;  %v800_v24 = vld [vmem:[%s799_s17] sm:$0x3]  ;;  %s893_s17 = scalar_lea.vmem %s1582_s25, %s1882_s29  ;;  %s983_s29 = smul.u32 7, %s1617_s9 }
 0x832   : > { %v614_v25 = vpop.permute.xlu1 %613 }
 0x833   : > { %1346 = vmatmul.mubr.msk.bf16.vlgmr.msra.gmra.mxu1 %vm321_vm2, %v614_v25 }
 0x834   : > { %1356 = vmatpush3.bf16.msra.mxu1 %v1564_v1  ;;  %1357 = vmatprep.mubr.msk.bf16.mxu1 %vm1498_vm1, %v1497_v0 }
 0x835   : > { %1367 = vmatprep.subr.bf16.mxu1 %v1497_v0 }
 0x8f3   : > { %v652_v28 = vpop.f32.mrf.mxu1 }
 0x8f4   : > { %v658_v29 = vadd.f32 %v652_v28, %v610_v26 }
 0x8f5   : > { %v1347_v31 = vpop.f32.mrf.mxu1 }
 0x8f6   : > { %1433 = vtanh.f32 %v658_v29  ;;  %v1289_v37 = vmul.f32 -1.442695, %v658_v29  ;;  %v873_v31 = vstv %s1738_s5 }
 0x8f7   : > { %v655_v32 = vpop.f32.mrf.mxu1  ;;  %vm874_vm13 = vcmp.gt.s32.totalorder %v1595_v16, %v873_v31  ;;  %v1060_v31 = vstv %s983_s29  ;;  %s1813_s29 = scalar_lea.vmem %s1881_s3, %s1306_s21 }
 0x8f8   : > { %1435 = vpow2.f32 %v1289_v37  ;;  %v875_v32 = vsel %vm874_vm13, 1, %v1499_v10  ;;  %vm1061_vm3 = vcmp.gt.s32.totalorder %v1595_v16, %v1060_v31  ;;  %s505_s12 = scalar_lea.vmem %s1813_s29, %s1279_s11  ;;  %s600_s16 = scalar_lea.vmem %s1813_s29, %s1283_s23 }
 0x8f9   : > { %v1348_v33 = vpop.f32.mrf.mxu1  ;;  %s695_s21 = scalar_lea.vmem %s1813_s29, %s1287_s4  ;;  %s1072_s11 = scalar_lea.vmem %s1813_s29, %s1301_s24 }
 0x903   : > { %v1434_v35 = vpop.eup %1433 }
 0x904   : > { %668 = vrot.lane.b32.xlu0 %v1434_v35, %s1500_s27 }
 0x905   : > { %v1436_v38 = vpop.eup %1435 }
 0x906   : > { %v662_v39 = vadd.f32 1.0, %v1436_v38 }
 0x908   : > { %687 = vperm.xlu0 %1407, %v685_v36   ;;  %1437 = vrcp.f32 %v662_v39 }
 0x915   : > { %v1438_v40 = vpop.eup %1437 }
 0x916   : > { %v666_v44 = vmul.f32 %v1438_v40, %v603_v43 }
 0x976   : > { %v669_v41 = vpop.permute.xlu0 %668 }
 0x977   : > { %v671_v42 = vmul.f32 %v1438_v40, %v669_v41 }
 0x979   : > { %673 = vrot.lane.b32.xlu1 %v671_v42, %s1501_s28 }
 0x983   : > { %v1694_v48 = vpop.permute.xlu0 %687 }
 0x984   : > { %vm689_vm10 = vcmp.eq.s32.totalorder %v1694_v48, 1 }
 0x9eb   : > { %v674_v45 = vpop.permute.xlu1 %673 }
 0x9ec   : > { %v676_v46 = vadd.f32 %v674_v45, %v666_v44 }
 0x9ee   : > { %1439 = vtanh.f32 %v676_v46  ;;  %v698_v9 = vsel %vm689_vm10, %v676_v46, %v603_v43 }
 0x9fb   : > { %v1440_v47 = vpop.eup %1439 }
 0x9fc   : > { %679 = vrot.lane.b32.xlu1 %v1440_v47, %s1503_s6 }
 0xa6e   : > { %v680_v49 = vpop.permute.xlu1 %679 }
 0xa6f   : > { %v1696_v50 = vmul.f32 %v1438_v40, %v680_v49 }
 0xa71   : > { %v697_v51 = vsel %vm689_vm10, %v1696_v50, %v602_v23 }
 0xa72   : > { %v706_v52 = vpack.c.bf16 %v697_v51, %v697_v51 }
 0xa74   : > { %708 = vrot.lane.b32.xlu0 %v706_v52, %s1504_s7  ;;  %v894_v52 = vld [vmem:[%s893_s17] sm:$0x3]  ;;  %s986_s17 = scalar_lea.vmem %s1582_s25, %s1301_s24 }
 0xae6   : > { %v709_v53 = vpop.permute.xlu0 %708 }
 0xae7   : > { %1352 = vmatmul.mubr.msk.bf16.vlgmr.msra.gmra.mxu0 %vm321_vm2, %v709_v53 }
 0xae8   : > { %1362 = vmatpush3.bf16.msra.mxu0 %v1564_v1  ;;  %1363 = vmatprep.mubr.msk.bf16.mxu0 %vm1498_vm1, %v1497_v0 }
 0xba7   : > { %v747_v57 = vpop.f32.mrf.mxu0 }
 0xba8   : > { %v753_v58 = vadd.f32 %v747_v57, %v705_v55 }
 0xba9   : > { %v1353_v59 = vpop.f32.mrf.mxu0 }
 0xbaa   : > { %1441 = vtanh.f32 %v753_v58  ;;  %v1293_v3 = vmul.f32 -1.442695, %v753_v58 }
 0xbab   : > { %v750_v60 = vpop.f32.mrf.mxu0 }
 0xbac   : > { %1443 = vpow2.f32 %v1293_v3  ;;  %v967_v60 = vstv %s1764_s26 }
 0xbad   : > { %v1354_v61 = vpop.f32.mrf.mxu0  ;;  %vm968_vm15 = vcmp.gt.s32.totalorder %v1595_v16, %v967_v60 }
 0xbae   : > { %v969_v62 = vsel %vm968_vm15, 1, %v1499_v10 }
 0xbb7   : > { %v1442_v63 = vpop.eup %1441 }
 0xbb8   : > { %763 = vrot.lane.b32.xlu1 %v1442_v63, %s1500_s27 }
 0xbb9   : > { %v1444_v4 = vpop.eup %1443 }
 0xbba   : > { %v757_v5 = vadd.f32 1.0, %v1444_v4 }
 0xbbc   : > { %782 = vperm.xlu1 %1406, %v780_v2   ;;  %1445 = vrcp.f32 %v757_v5 }
 0xbc9   : > { %v1446_v6 = vpop.eup %1445 }
 0xbca   : > { %v761_v11 = vmul.f32 %v1446_v6, %v698_v9 }
 0xc2a   : > { %v764_v7 = vpop.permute.xlu1 %763 }
 0xc2b   : > { %v766_v8 = vmul.f32 %v1446_v6, %v764_v7 }
 0xc2d   : > { %768 = vrot.lane.b32.xlu0 %v766_v8, %s1501_s28 }
 0xc37   : > { %v1723_v15 = vpop.permute.xlu1 %782 }
 0xc38   : > { %vm784_vm12 = vcmp.eq.s32.totalorder %v1723_v15, 1 }
 0xc9f   : > { %v769_v12 = vpop.permute.xlu0 %768 }
 0xca0   : > { %v771_v13 = vadd.f32 %v769_v12, %v761_v11 }
 0xca2   : > { %1447 = vtanh.f32 %v771_v13  ;;  %v793_v39 = vsel %vm784_vm12, %v771_v13, %v698_v9 }
 0xcaf   : > { %v1448_v14 = vpop.eup %1447 }
 0xcb0   : > { %774 = vrot.lane.b32.xlu0 %v1448_v14, %s1503_s6 }
 0xd22   : > { %v775_v17 = vpop.permute.xlu0 %774 }
 0xd23   : > { %v1725_v18 = vmul.f32 %v1446_v6, %v775_v17 }
 0xd25   : > { %v792_v19 = vsel %vm784_vm12, %v1725_v18, %v697_v51  ;;  %v785_v16 = vsel %vm784_vm12, %v1725_v18, 0.0 }
 0xd26   : > { %v801_v21 = vpack.c.bf16 %v792_v19, %v792_v19 }
 0xd28   : > { %803 = vrot.lane.b32.xlu1 %v801_v21, %s1504_s7 }
 0xd9a   : > { %v804_v23 = vpop.permute.xlu1 %803 }
 0xd9b   : > { %1358 = vmatmul.mubr.msk.bf16.vlgmr.msra.gmra.mxu1 %vm321_vm2, %v804_v23 }
 0xd9c   : > { %1368 = vmatpush3.bf16.msra.mxu1 %v1564_v1  ;;  %1369 = vmatprep.mubr.msk.bf16.mxu1 %vm1498_vm1, %v1497_v0 }
 0xe5b   : > { %v842_v25 = vpop.f32.mrf.mxu1 }
 0xe5c   : > { %v848_v26 = vadd.f32 %v842_v25, %v800_v24  ;;  %v987_v24 = vld [vmem:[%s986_s17] sm:$0x3]  ;;  %s406_s17 = scalar_lea.vmem %s1813_s29, %s1275_s22  ;;  %s790_s22 = scalar_lea.vmem %s1813_s29, %s1291_s19 }
 0xe5d   : > { %v1359_v28 = vpop.f32.mrf.mxu1 }
 0xe5e   : > { %1449 = vtanh.f32 %v848_v26  ;;  %v1297_v33 = vmul.f32 -1.442695, %v848_v26 }
 0xe5f   : > { %v845_v29 = vpop.f32.mrf.mxu1 }
 0xe60   : > { %1451 = vpow2.f32 %v1297_v33  ;;  %v401_v33 = vsel %vm400_vm4, %v1603_v30, 0.0 }
 0xe61   : > { %v1360_v1 = vpop.f32.mrf.mxu1 }
 0xe6b   : > { %v1450_v0 = vpop.eup %1449 }
 0xe6c   : > { %858 = vrot.lane.b32.xlu0 %v1450_v0, %s1500_s27 }
 0xe6d   : > { %v1452_v34 = vpop.eup %1451 }
 0xe6e   : > { %v852_v35 = vadd.f32 1.0, %v1452_v34  ;;  %v595_v34 = vsel %vm594_vm8, %v1666_v22, 0.0 }
 0xe70   : > { %877 = vperm.xlu0 %1407, %v875_v32   ;;  %1453 = vrcp.f32 %v852_v35  ;;  %v1062_v32 = vsel %vm1061_vm3, 1, %v1499_v10 }
 0xe7d   : > { %v1454_v36 = vpop.eup %1453 }
 0xe7e   : > { %v856_v40 = vmul.f32 %v1454_v36, %v793_v39 }
 0xede   : > { %v859_v37 = vpop.permute.xlu0 %858 }
 0xedf   : > { %v861_v38 = vmul.f32 %v1454_v36, %v859_v37 }
 0xee1   : > { %863 = vrot.lane.b32.xlu1 %v861_v38, %s1501_s28 }
 0xeeb   : > { %v1752_v44 = vpop.permute.xlu0 %877 }
 0xeec   : > { %vm879_vm14 = vcmp.eq.s32.totalorder %v1752_v44, 1 }
 0xf53   : > { %v864_v41 = vpop.permute.xlu1 %863 }
 0xf54   : > { %v866_v42 = vadd.f32 %v864_v41, %v856_v40 }
 0xf56   : > { %1455 = vtanh.f32 %v866_v42  ;;  %v888_v7 = vsel %vm879_vm14, %v866_v42, %v793_v39 }
 0xf63   : > { %v1456_v43 = vpop.eup %1455 }
 0xf64   : > { %869 = vrot.lane.b32.xlu1 %v1456_v43, %s1503_s6  ;;  %v500_v43 = vsel %vm499_vm6, %v1636_v56, 0.0 }
 0xfd6   : > { %v870_v45 = vpop.permute.xlu1 %869 }
 0xfd7   : > { %v1754_v46 = vmul.f32 %v1454_v36, %v870_v45  ;;  %v690_v45 = vsel %vm689_vm10, %v1696_v50, 0.0 }
 0xfd9   : > { %v887_v47 = vsel %vm879_vm14, %v1754_v46, %v792_v19 }
 0xfda   : > { %v895_v49 = vpack.c.bf16 %v887_v47, %v887_v47 }
 0xfdc   : > { %897 = vrot.lane.b32.xlu0 %v895_v49, %s1504_s7 }
0x104e   : > { %v898_v51 = vpop.permute.xlu0 %897 }
0x104f   : > { %1364 = vmatmul.mubr.msk.bf16.vlgmr.msra.gmra.mxu0 %vm321_vm2, %v898_v51 }
0x110f   : > { %v936_v53 = vpop.f32.mrf.mxu0 }
0x1110   : > { %v942_v55 = vadd.f32 %v936_v53, %v894_v52 }
0x1111   : > { %v1365_v57 = vpop.f32.mrf.mxu0 }
0x1112   : > { %1457 = vtanh.f32 %v942_v55  ;;  %v1300_v63 = vmul.f32 -1.442695, %v942_v55 }
0x1113   : > { %v939_v58 = vpop.f32.mrf.mxu0 }
0x1114   : > { %1459 = vpow2.f32 %v1300_v63 }
0x1115   : > { %v1366_v59 = vpop.f32.mrf.mxu0 }
0x111f   : > { %v1458_v61 = vpop.eup %1457 }
0x1120   : > { %952 = vrot.lane.b32.xlu1 %v1458_v61, %s1500_s27 }
0x1121   : > { %v1460_v2 = vpop.eup %1459 }
0x1122   : > { %v946_v3 = vadd.f32 1.0, %v1460_v2 }
0x1124   : > { %971 = vperm.xlu1 %1406, %v969_v62   ;;  %1461 = vrcp.f32 %v946_v3 }
0x1131   : > { %v1462_v4 = vpop.eup %1461 }
0x1132   : > { %v950_v8 = vmul.f32 %v1462_v4, %v888_v7 }
0x1192   : > { %v953_v5 = vpop.permute.xlu1 %952 }
0x1193   : > { %v955_v6 = vmul.f32 %v1462_v4, %v953_v5 }
0x1195   : > { %957 = vrot.lane.b32.xlu0 %v955_v6, %s1501_s28 }
0x119f   : > { %v972_v13 = vpop.permute.xlu1 %971 }
0x11a0   : > { %vm973_vm1 = vcmp.eq.s32.totalorder %v972_v13, 1 }
0x1207   : > { %v958_v9 = vpop.permute.xlu0 %957 }
0x1208   : > { %v960_v11 = vadd.f32 %v958_v9, %v950_v8 }
0x120a   : > { %1463 = vtanh.f32 %v960_v11  ;;  %v982_v37 = vsel %vm973_vm1, %v960_v11, %v888_v7 }
0x1217   : > { %v1464_v12 = vpop.eup %1463 }
0x1218   : > { %963 = vrot.lane.b32.xlu0 %v1464_v12, %s1503_s6 }
0x128a   : > { %v964_v14 = vpop.permute.xlu0 %963 }
0x128b   : > { %v966_v17 = vmul.f32 %v1462_v4, %v964_v14 }
0x128d   : > { %v1779_v19 = vsel %vm973_vm1, %v966_v17, %v887_v47  ;;  %v974_v10 = vsel %vm973_vm1, %v966_v17, 0.0  ;;  %v880_v47 = vsel %vm879_vm14, %v1754_v46, 0.0 }
0x128e   : > { %v988_v21 = vpack.c.bf16 %v1779_v19, %v1779_v19 }
0x1290   : > { %990 = vrot.lane.b32.xlu1 %v988_v21, %s1504_s7 }
0x1302   : > { %v991_v23 = vpop.permute.xlu1 %990 }
0x1303   : > { %1370 = vmatmul.mubr.msk.bf16.vlgmr.msra.gmra.mxu1 %vm321_vm2, %v991_v23 }
0x13c3   : > { %v1029_v25 = vpop.f32.mrf.mxu1 }
0x13c4   : > { %v1035_v26 = vadd.f32 %v1029_v25, %v987_v24 }
0x13c5   : > { %v1371_v28 = vpop.f32.mrf.mxu1 }
0x13c6   : > { %1465 = vtanh.f32 %v1035_v26  ;;  %v1303_v27 = vmul.f32 -1.442695, %v1035_v26 }
0x13c7   : > { %v1032_v29 = vpop.f32.mrf.mxu1 }
0x13c8   : > { %1467 = vpow2.f32 %v1303_v27 }
0x13c9   : > { %v1372_v1 = vpop.f32.mrf.mxu1 }
0x13d3   : > { %v1466_v0 = vpop.eup %1465 }
0x13d4   : > { %1045 = vrot.lane.b32.xlu0 %v1466_v0, %s1500_s27 }
0x13d5   : > { %v1468_v30 = vpop.eup %1467 }
0x13d6   : > { %v1039_v35 = vadd.f32 1.0, %v1468_v30 }
0x13d8   : > { %1064 = vperm.xlu0 %1407, %v1062_v32   ;;  %1469 = vrcp.f32 %v1039_v35 }
0x13dc   : > { %403 = vrot.lane.b32.xlu0 %v401_v33, %s1504_s7 }
0x13e0   : > { %597 = vrot.lane.b32.xlu0 %v595_v34, %s1504_s7 }
0x13e4   : > { %787 = vrot.lane.b32.xlu0 %v785_v16, %s1504_s7 }
0x13e5   : > { %v1470_v20 = vpop.eup %1469 }
0x13e6   : > { %v1043_v38 = vmul.f32 %v1470_v20, %v982_v37 }
0x13e8   : > { %976 = vrot.lane.b32.xlu0 %v974_v10, %s1504_s7 }
0x1446   : > { %v1046_v22 = vpop.permute.xlu0 %1045 }
0x1447   : > { %v1048_v36 = vmul.f32 %v1470_v20, %v1046_v22 }
0x1449   : > { %1050 = vrot.lane.b32.xlu1 %v1048_v36, %s1501_s28  ;;  %s1505_s28 = smov 112  }
0x1453   : > { %v1065_v15 = vpop.permute.xlu0 %1064 }
0x1454   : > { %vm1066_vm2 = vcmp.eq.s32.totalorder %v1065_v15, 1 }
0x1457   : > { %v404_v18 = vpop.permute.xlu0 %403 }
0x1458   : > { %408 = vst.msk [vmem:[%s406_s17] sm:$0x3] %vm295_vm0, %v404_v18 }
0x145b   : > { %v598_v56 = vpop.permute.xlu0 %597 }
0x145f   : > { %v788_v46 = vpop.permute.xlu0 %787 }
0x1463   : > { %v977_v53 = vpop.permute.xlu0 %976 }
0x14bb   : > { %v1051_v39 = vpop.permute.xlu1 %1050 }
0x14bc   : > { %v1053_v40 = vadd.f32 %v1051_v39, %v1043_v38 }
0x14be   : > { %1471 = vtanh.f32 %v1053_v40  ;;  %v1075_v41 = vsel %vm1066_vm2, %v1053_v40, %v982_v37 }
0x14cb   : > { %v1472_v42 = vpop.eup %1471 }
0x14cc   : > { %1056 = vrot.lane.b32.xlu1 %v1472_v42, %s1503_s6  ;;  %s885_s6 = scalar_lea.vmem %s1813_s29, %s1295_s8 }
0x14d0   : > { %502 = vrot.lane.b32.xlu1 %v500_v43, %s1504_s7 }
0x14d4   : > { %692 = vrot.lane.b32.xlu1 %v690_v45, %s1504_s7 }
0x14d8   : > { %882 = vrot.lane.b32.xlu1 %v880_v47, %s1504_s7 }
0x153e   : > { %v1057_v54 = vpop.permute.xlu1 %1056 }
0x153f   : > { %v1059_v49 = vmul.f32 %v1470_v20, %v1057_v54 }
0x1541   : > { %v1067_v48 = vsel %vm1066_vm2, %v1059_v49, 0.0  ;;  %v1074_v50 = vsel %vm1066_vm2, %v1059_v49, %v1779_v19 }
0x1542   : > { %1069 = vrot.lane.b32.xlu1 %v1067_v48, %s1504_s7  ;;  %v503_v44 = vpop.permute.xlu1 %502  ;;  %1077 = vrot.lane.b32.xlu0 %v1074_v50, %s1504_s7  ;;  %s1883_s7 = sshll.u32 %s1764_s26, 1 }
0x1543   : > { %506 = vst.msk [vmem:[%s505_s12] sm:$0x3] %vm295_vm0, %v503_v44  ;;  %s979_s10 = scalar_lea.vmem %s1813_s29, %s1883_s7 }
0x1544   : > { %601 = vst.msk [vmem:[%s600_s16] sm:$0x3] %vm295_vm0, %v598_v56 }
0x1546   : > { %1082 = vrot.lane.b32.xlu1 %v1075_v41, %s1505_s28  ;;  %v693_v51 = vpop.permute.xlu1 %692 }
0x1547   : > { %696 = vst.msk [vmem:[%s695_s21] sm:$0x3] %vm295_vm0, %v693_v51 }
0x1548   : > { %791 = vst.msk [vmem:[%s790_s22] sm:$0x3] %vm295_vm0, %v788_v46 }
0x154a   : > { %v883_v52 = vpop.permute.xlu1 %882 }
0x154b   : > { %886 = vst.msk [vmem:[%s885_s6] sm:$0x3] %vm295_vm0, %v883_v52 }
0x154c   : > { %980 = vst.msk [vmem:[%s979_s10] sm:$0x3] %vm295_vm0, %v977_v53 }
0x15b4   : > { %v1070_v55 = vpop.permute.xlu1 %1069  ;;  %v1078_v57 = vpop.permute.xlu0 %1077 }
0x15b5   : > { %1073 = vst.msk [vmem:[%s1072_s11] sm:$0x3] %vm295_vm0, %v1070_v55  ;;  %1080 = vst.msk [vmem:[#allocation2] sm:$0x3] %vm295_vm0, %v1078_v57 }
0x15b8   : > { %v1083_v58 = vpop.permute.xlu1 %1082 }
0x15b9   : > { %1085 = vst.msk [vmem:[#allocation3] sm:$0x3] %vm295_vm0, %v1083_v58 }
0x15ba PF: > { %s13_s14 = sadd.s32 1, %s1495_s14   ;;  %s1884_s12 = smov %s1491_s13 }
0x15bb   : > { %p10_p5 = scmp.ge.s32.totalorder %s13_s14, 4   ;;  %s1885_s13 = smov %s1887_s15 }
0x15bd   :  { %12 = sbr.rel (!%p10_p5) target bundleno = 2 (0x2), region = 85 }

</bundles_post_ra>
